<compile_context>
chip_gen: v6e
topology: v6e:2x2x1
jax: 0.10.0
libtpu: 0.0.40
codegen_flags: <defaults>
</compile_context>

<pallas_src>
import functools

import jax
import jax.numpy as jnp
from jax import lax
from jax.experimental import pallas as pl
from jax.experimental.pallas import tpu as pltpu


def _gradient_loss_kernel(pred_ref, targ_ref, mask_ref,        # (TH, W) inputs
                          gsum_ref, msum_ref,                   # (1, scales) outputs
                          acc_g_ref, acc_m_ref,                 # (1, scales) scratch
                          carry_d_ref, carry_m_ref,             # (CR, W) scratch
                          *, scales, num_h_tiles):
    h = pl.program_id(1)
    th, w = pred_ref.shape
    carry_rows = carry_d_ref.shape[0]

    pred = pred_ref[...].astype(jnp.float32)
    targ = targ_ref[...].astype(jnp.float32)
    mask = mask_ref[...].astype(jnp.float32)
    pt = pred - targ                      # reused by every scale
    diff = mask * pt                      # scale-0 masked difference

    # Small per-axis iotas: selection/edge weights are built as (TH,1) and (1,W)
    # vectors and broadcast-multiplied — no full-tile integer compares needed.
    ri = lax.broadcasted_iota(jnp.int32, (th, 1), 0)            # sublane index
    ci = lax.broadcasted_iota(jnp.int32, (1, w), 1)             # lane index
    lane = lax.broadcasted_iota(jnp.int32, (1, scales), 1)

    @pl.when(h == 0)
    def _init():
        acc_g_ref[...] = jnp.zeros_like(acc_g_ref)
        acc_m_ref[...] = jnp.zeros_like(acc_m_ref)

    g_acc = acc_g_ref[...]
    m_acc = acc_m_ref[...]
    for s in range(scales):                      # all scales fused: one data pass
        step = 1 << s
        if s == 0:
            # No subsampling at scale 0 — skip the selection work entirely.
            mask_s = mask
            diff_s = diff
        else:
            # Separable ::step selection: local row index == global row index
            # modulo every step because TH is a multiple of the largest step
            # whenever the image is split into row tiles.
            wr = jnp.where((ri & (step - 1)) == 0, 1.0, 0.0)    # (TH, 1)
            wc = jnp.where((ci & (step - 1)) == 0, 1.0, 0.0)    # (1, W)
            sel = wr * wc                                       # one broadcast mul
            mask_s = mask * sel
            diff_s = pt * mask_s          # == sel * mask * (p - t)

        # x-gradient: pairs (j, j+step); roll brings column j+step to column j.
        # Wrap-around columns are killed by the edge weight folded into the
        # rolled mask (selection itself is already carried by mask_s/diff_s).
        edge_c = jnp.where(ci < (w - step), 1.0, 0.0)           # (1, W)
        rx_d = pltpu.roll(diff_s, shift=(w - step) % w, axis=1)
        rx_m = pltpu.roll(mask_s, shift=(w - step) % w, axis=1) * edge_c
        g_x = jnp.abs(rx_d - diff_s) * (rx_m * mask_s)

        # y-gradient within the tile: pairs (i, i+step), sublane roll.
        edge_r = jnp.where(ri < (th - step), 1.0, 0.0)          # (TH, 1)
        ry_d = pltpu.roll(diff_s, shift=(th - step) % th, axis=0)
        ry_m = pltpu.roll(mask_s, shift=(th - step) % th, axis=0) * edge_r
        g_y = jnp.abs(ry_d - diff_s) * (ry_m * mask_s)

        g_acc = g_acc + jnp.where(lane == s, jnp.sum(g_x + g_y), 0.0)
        m_acc = m_acc + jnp.where(lane == s, jnp.sum(mask_s), 0.0)

    acc_g_ref[...] = g_acc
    acc_m_ref[...] = m_acc

    if num_h_tiles > 1:
        # y-gradient pairs straddling the row-tile boundary: for every scale the
        # only such pair is (previous tile's row TH-step, this tile's row 0).
        @pl.when(h > 0)
        def _boundary():
            d0 = diff[0:1, :]
            m0 = mask[0:1, :]
            gb = acc_g_ref[...]
            for s in range(scales):
                step = 1 << s
                k = carry_rows - step
                dp = carry_d_ref[k:k + 1, :]
                mp = carry_m_ref[k:k + 1, :]
                wc1 = jnp.where((ci & (step - 1)) == 0, 1.0, 0.0)
                gb = gb + jnp.where(
                    lane == s,
                    jnp.sum(jnp.abs(d0 - dp) * (m0 * mp * wc1)), 0.0)
            acc_g_ref[...] = gb

        # Stash this tile's last rows for the next row-tile of the same image.
        carry_d_ref[...] = diff[th - carry_rows:th, :]
        carry_m_ref[...] = mask[th - carry_rows:th, :]

    # Emit the per-image, per-scale sums once, at the last row-tile.
    @pl.when(h == num_h_tiles - 1)
    def _finalize():
        gsum_ref[...] = acc_g_ref[...]
        msum_ref[...] = acc_m_ref[...]


def _pick_tile_h(H, W, scales, tile_h):
    """Row-tile size: multiple of max(8, 2**(scales-1)), divides H, and keeps
    3 inputs x 2 pipeline buffers of f32 well inside scoped VMEM (v7x-safe)."""
    unit = max(8, 1 << (scales - 1))
    if tile_h is not None:
        if tile_h < H and H % tile_h == 0 and tile_h % unit == 0:
            return tile_h
        return H
    budget_bytes = 8 * 1024 * 1024          # << 32 MiB scoped / 64 MiB v7x VMEM
    cap = max(unit, budget_bytes // (3 * 2 * 4 * max(W, 1)))
    if H <= cap:
        return H
    best = H                                 # fallback: whole image per block
    for th in range(unit, cap + 1, unit):
        if H % th == 0:
            best = th
    return best


@functools.partial(jax.jit, static_argnames=("scales", "reduction", "tile_h"))
def gradient_loss_forward(prediction, target, mask, scales=4,
                          reduction="batch-based", tile_h=None):
    """Pallas TPU equivalent of GradientLoss(scales, reduction).forward.

    Inputs may be f32 or bf16; the kernel accumulates in f32 either way."""
    B, H, W = prediction.shape
    th = _pick_tile_h(H, W, scales, tile_h)
    if H % th != 0:
        th = H
    nh = H // th
    carry_rows = max(8, 1 << (scales - 1))

    in_spec = pl.BlockSpec((pl.Squeezed(), th, W), lambda b, h: (b, h, 0))
    out_spec = pl.BlockSpec((pl.Squeezed(), 1, scales), lambda b, h: (b, 0, 0))

    kernel = functools.partial(_gradient_loss_kernel,
                               scales=scales, num_h_tiles=nh)

    gsum, msum = pl.pallas_call(
        kernel,
        grid=(B, nh),
        in_specs=[in_spec, in_spec, in_spec],
        out_specs=(out_spec, out_spec),
        out_shape=(
            jax.ShapeDtypeStruct((B, 1, scales), jnp.float32),
            jax.ShapeDtypeStruct((B, 1, scales), jnp.float32),
        ),
        scratch_shapes=[
            pltpu.VMEM((1, scales), jnp.float32),
            pltpu.VMEM((1, scales), jnp.float32),
            pltpu.VMEM((carry_rows, W), jnp.float32),
            pltpu.VMEM((carry_rows, W), jnp.float32),
        ],
        compiler_params=pltpu.CompilerParams(
            # batch axis shards across TensorCores (v7x); the row-tile axis
            # carries the accumulator + halo carry, so it stays 'arbitrary'.
            dimension_semantics=("parallel", "arbitrary"),
            vmem_limit_bytes=32 * 1024 * 1024,
        ),
    )(prediction, target, mask)

    gsum = gsum[:, 0, :]          # (B, scales)
    msum = msum[:, 0, :]          # (B, scales)

    if reduction == "batch-based":
        g_tot = jnp.sum(gsum, axis=0)
        m_tot = jnp.sum(msum, axis=0)
        safe = jnp.where(m_tot == 0.0, 1.0, m_tot)
        per_scale = jnp.where(m_tot == 0.0, 0.0, g_tot / safe)
        return jnp.sum(per_scale)
    else:                          # image-based
        safe = jnp.where(msum == 0.0, 1.0, msum)
        per_image = jnp.where(msum == 0.0, gsum, gsum / safe)
        return jnp.sum(jnp.mean(per_image, axis=0))


def _reference(prediction, target, mask, scales=4, reduction="batch-based"):
    """Pure-JAX reference mirroring the PyTorch code."""
    total = 0.0
    for scale in range(scales):
        step = 2 ** scale
        p = prediction[:, ::step, ::step]
        t = target[:, ::step, ::step]
        m = mask[:, ::step, ::step]
        diff = m * (p - t)
        gx = jnp.abs(diff[:, :, 1:] - diff[:, :, :-1]) * (m[:, :, 1:] * m[:, :, :-1])
        gy = jnp.abs(diff[:, 1:, :] - diff[:, :-1, :]) * (m[:, 1:, :] * m[:, :-1, :])
        image_loss = jnp.sum(gx, axis=(1, 2)) + jnp.sum(gy, axis=(1, 2))
        M = jnp.sum(m, axis=(1, 2))
        if reduction == "batch-based":
            msum = jnp.sum(M)
            total = total + jnp.where(
                msum == 0.0, 0.0,
                jnp.sum(image_loss) / jnp.where(msum == 0.0, 1.0, msum))
        else:
            per_image = jnp.where(M == 0.0, image_loss,
                                  image_loss / jnp.where(M == 0.0, 1.0, M))
            total = total + jnp.mean(per_image)
    return total


if __name__ == "__main__":
    key = jax.random.PRNGKey(0)
    k1, k2, k3 = jax.random.split(key, 3)
    B, H, W = 2, 16, 128
    prediction = jax.random.normal(k1, (B, H, W), dtype=jnp.float32)
    target = jax.random.normal(k2, (B, H, W), dtype=jnp.float32)
    mask = (jax.random.uniform(k3, (B, H, W)) > 0.3).astype(jnp.float32)

    # Tiled path: grid (B, H/8) — exercises the cross-tile halo carry.
    out_tiled = jax.block_until_ready(
        gradient_loss_forward(prediction, target, mask, scales=4, tile_h=8))
    # Auto tile size (single row-tile per image at this small H).
    out_auto = jax.block_until_ready(
        gradient_loss_forward(prediction, target, mask, scales=4))
    ref = _reference(prediction, target, mask, scales=4)
    assert jnp.allclose(out_tiled, ref, rtol=1e-4, atol=1e-5), (out_tiled, ref)
    assert jnp.allclose(out_auto, ref, rtol=1e-4, atol=1e-5), (out_auto, ref)

    # image-based reduction path (reuses the same per-image kernel outputs).
    out_img = jax.block_until_ready(
        gradient_loss_forward(prediction, target, mask, scales=4,
                              reduction="image-based", tile_h=8))
    ref_img = _reference(prediction, target, mask, scales=4,
                         reduction="image-based")
    assert jnp.allclose(out_img, ref_img, rtol=1e-4, atol=1e-5), (out_img, ref_img)

    print("KERNEL_OK")
</pallas_src>

<mosaic_0001>
module attributes {stable_mosaic.version = 11 : i64} {
  func.func @_gradient_loss_kernel(%arg0: i32, %arg1: i32, %arg2: memref<1x8x128xf32, #tpu.memory_space<vmem>>, %arg3: memref<1x8x128xf32, #tpu.memory_space<vmem>>, %arg4: memref<1x8x128xf32, #tpu.memory_space<vmem>>, %arg5: memref<1x1x4xf32, #tpu.memory_space<vmem>>, %arg6: memref<1x1x4xf32, #tpu.memory_space<vmem>>, %arg7: memref<1x4xf32, #tpu.memory_space<vmem>>, %arg8: memref<1x4xf32, #tpu.memory_space<vmem>>, %arg9: memref<8x128xf32, #tpu.memory_space<vmem>>, %arg10: memref<8x128xf32, #tpu.memory_space<vmem>>) attributes {dimension_semantics = [#tpu.dimension_semantics<parallel>, #tpu.dimension_semantics<arbitrary>], iteration_bounds = array<i64: 2, 2>, scalar_prefetch = 0 : i64, scratch_operands = 4 : i64, tpu.core_type = #tpu.core_type<tc>, window_params = [{transform_indices = @transform_0, window_bounds = array<i64: 1, 8, 128>}, {transform_indices = @transform_1, window_bounds = array<i64: 1, 8, 128>}, {transform_indices = @transform_2, window_bounds = array<i64: 1, 8, 128>}, {transform_indices = @transform_3, window_bounds = array<i64: 1, 1, 4>}, {transform_indices = @transform_4, window_bounds = array<i64: 1, 1, 4>}]} {
    %c0 = arith.constant 0 : index
    %c0_0 = arith.constant 0 : index
    %c0_1 = arith.constant 0 : index
    %0 = vector.load %arg2[%c0, %c0_0, %c0_1] : memref<1x8x128xf32, #tpu.memory_space<vmem>>, vector<1x8x128xf32>
    %1 = vector.shape_cast %0 : vector<1x8x128xf32> to vector<8x128xf32>
    %c0_2 = arith.constant 0 : index
    %c0_3 = arith.constant 0 : index
    %c0_4 = arith.constant 0 : index
    %2 = vector.load %arg3[%c0_2, %c0_3, %c0_4] : memref<1x8x128xf32, #tpu.memory_space<vmem>>, vector<1x8x128xf32>
    %3 = vector.shape_cast %2 : vector<1x8x128xf32> to vector<8x128xf32>
    %c0_5 = arith.constant 0 : index
    %c0_6 = arith.constant 0 : index
    %c0_7 = arith.constant 0 : index
    %4 = vector.load %arg4[%c0_5, %c0_6, %c0_7] : memref<1x8x128xf32, #tpu.memory_space<vmem>>, vector<1x8x128xf32>
    %5 = vector.shape_cast %4 : vector<1x8x128xf32> to vector<8x128xf32>
    %6 = arith.subf %1, %3 : vector<8x128xf32>
    %7 = arith.mulf %5, %6 : vector<8x128xf32>
    %8 = tpu.iota {dimensions = array<i32: 0>} : vector<8x1xi32>
    %9 = tpu.iota {dimensions = array<i32: 1>} : vector<1x128xi32>
    %10 = tpu.iota {dimensions = array<i32: 1>} : vector<1x4xi32>
    %c0_i32 = arith.constant 0 : i32
    %11 = arith.cmpi eq, %arg1, %c0_i32 : i32
    %12 = arith.extui %11 : i1 to i32
    %c0_i32_8 = arith.constant 0 : i32
    %13 = arith.cmpi ne, %12, %c0_i32_8 : i32
    scf.if %13 {
      %cst_102 = arith.constant 0.000000e+00 : f32
      %271 = vector.broadcast %cst_102 : f32 to vector<1x4xf32>
      %c0_103 = arith.constant 0 : index
      %c0_104 = arith.constant 0 : index
      %272 = vector.load %arg7[%c0_103, %c0_104] : memref<1x4xf32, #tpu.memory_space<vmem>>, vector<1x4xf32>
      tpu.vector_store %arg7[%c0_103, %c0_104], %271 {strides = array<i32>} : memref<1x4xf32, #tpu.memory_space<vmem>>, vector<1x4xf32>,
      %cst_105 = arith.constant 0.000000e+00 : f32
      %273 = vector.broadcast %cst_105 : f32 to vector<1x4xf32>
      %c0_106 = arith.constant 0 : index
      %c0_107 = arith.constant 0 : index
      %274 = vector.load %arg8[%c0_106, %c0_107] : memref<1x4xf32, #tpu.memory_space<vmem>>, vector<1x4xf32>
      tpu.vector_store %arg8[%c0_106, %c0_107], %273 {strides = array<i32>} : memref<1x4xf32, #tpu.memory_space<vmem>>, vector<1x4xf32>,
    } else {
    }
    %c0_9 = arith.constant 0 : index
    %c0_10 = arith.constant 0 : index
    %14 = vector.load %arg7[%c0_9, %c0_10] : memref<1x4xf32, #tpu.memory_space<vmem>>, vector<1x4xf32>
    %c0_11 = arith.constant 0 : index
    %c0_12 = arith.constant 0 : index
    %15 = vector.load %arg8[%c0_11, %c0_12] : memref<1x4xf32, #tpu.memory_space<vmem>>, vector<1x4xf32>
    %c127_i32 = arith.constant 127 : i32
    %16 = vector.broadcast %c127_i32 : i32 to vector<1x128xi32>
    %17 = arith.cmpi slt, %9, %16 : vector<1x128xi32>
    %cst = arith.constant 1.000000e+00 : f32
    %cst_13 = arith.constant 0.000000e+00 : f32
    %18 = vector.broadcast %cst : f32 to vector<1x128xf32>
    %19 = vector.broadcast %cst_13 : f32 to vector<1x128xf32>
    %20 = arith.select %17, %18, %19 : vector<1x128xi1>, vector<1x128xf32>
    %c127_i32_14 = arith.constant 127 : i32
    %21 = tpu.dynamic_rotate %7 by %c127_i32_14 dim 1 : vector<8x128xf32>, i32 -> vector<8x128xf32>
    %c127_i32_15 = arith.constant 127 : i32
    %22 = tpu.dynamic_rotate %5 by %c127_i32_15 dim 1 : vector<8x128xf32>, i32 -> vector<8x128xf32>
    %23 = vector.broadcast %20 : vector<1x128xf32> to vector<8x128xf32>
    %24 = arith.mulf %22, %23 : vector<8x128xf32>
    %25 = arith.subf %21, %7 : vector<8x128xf32>
    %26 = math.absf %25 : vector<8x128xf32>
    %27 = arith.mulf %24, %5 : vector<8x128xf32>
    %28 = arith.mulf %26, %27 : vector<8x128xf32>
    %c7_i32 = arith.constant 7 : i32
    %29 = vector.broadcast %c7_i32 : i32 to vector<8x1xi32>
    %30 = arith.cmpi slt, %8, %29 : vector<8x1xi32>
    %cst_16 = arith.constant 1.000000e+00 : f32
    %cst_17 = arith.constant 0.000000e+00 : f32
    %31 = vector.broadcast %cst_16 : f32 to vector<8x1xf32>
    %32 = vector.broadcast %cst_17 : f32 to vector<8x1xf32>
    %33 = arith.select %30, %31, %32 : vector<8x1xi1>, vector<8x1xf32>
    %c7_i32_18 = arith.constant 7 : i32
    %34 = tpu.dynamic_rotate %7 by %c7_i32_18 dim 0 : vector<8x128xf32>, i32 -> vector<8x128xf32>
    %c7_i32_19 = arith.constant 7 : i32
    %35 = tpu.dynamic_rotate %5 by %c7_i32_19 dim 0 : vector<8x128xf32>, i32 -> vector<8x128xf32>
    %36 = vector.broadcast %33 : vector<8x1xf32> to vector<8x128xf32>
    %37 = arith.mulf %35, %36 : vector<8x128xf32>
    %38 = arith.subf %34, %7 : vector<8x128xf32>
    %39 = math.absf %38 : vector<8x128xf32>
    %40 = arith.mulf %37, %5 : vector<8x128xf32>
    %41 = arith.mulf %39, %40 : vector<8x128xf32>
    %c0_i32_20 = arith.constant 0 : i32
    %42 = vector.broadcast %c0_i32_20 : i32 to vector<1x4xi32>
    %43 = arith.cmpi eq, %10, %42 : vector<1x4xi32>
    %44 = arith.addf %28, %41 : vector<8x128xf32>
    %45 = vector.shape_cast %44 : vector<8x128xf32> to vector<1x8x128xf32>
    %cst_21 = arith.constant dense<0.000000e+00> : vector<1xf32>
    %46 = vector.multi_reduction <add>, %45, %cst_21 [1, 2] : vector<1x8x128xf32> to vector<1xf32>
    %47 = vector.shape_cast %46 : vector<1xf32> to vector<1x1x1xf32>
    %48 = vector.extract %47[0, 0, 0] : f32 from vector<1x1x1xf32>
    %cst_22 = arith.constant 0.000000e+00 : f32
    %49 = vector.broadcast %48 : f32 to vector<1x4xf32>
    %50 = vector.broadcast %cst_22 : f32 to vector<1x4xf32>
    %51 = arith.select %43, %49, %50 : vector<1x4xi1>, vector<1x4xf32>
    %52 = arith.addf %14, %51 : vector<1x4xf32>
    %c0_i32_23 = arith.constant 0 : i32
    %53 = vector.broadcast %c0_i32_23 : i32 to vector<1x4xi32>
    %54 = arith.cmpi eq, %10, %53 : vector<1x4xi32>
    %55 = vector.shape_cast %5 : vector<8x128xf32> to vector<1x8x128xf32>
    %cst_24 = arith.constant dense<0.000000e+00> : vector<1xf32>
    %56 = vector.multi_reduction <add>, %55, %cst_24 [1, 2] : vector<1x8x128xf32> to vector<1xf32>
    %57 = vector.shape_cast %56 : vector<1xf32> to vector<1x1x1xf32>
    %58 = vector.extract %57[0, 0, 0] : f32 from vector<1x1x1xf32>
    %cst_25 = arith.constant 0.000000e+00 : f32
    %59 = vector.broadcast %58 : f32 to vector<1x4xf32>
    %60 = vector.broadcast %cst_25 : f32 to vector<1x4xf32>
    %61 = arith.select %54, %59, %60 : vector<1x4xi1>, vector<1x4xf32>
    %62 = arith.addf %15, %61 : vector<1x4xf32>
    %c1_i32 = arith.constant 1 : i32
    %63 = vector.broadcast %c1_i32 : i32 to vector<8x1xi32>
    %64 = arith.andi %8, %63 : vector<8x1xi32>
    %c0_i32_26 = arith.constant 0 : i32
    %65 = vector.broadcast %c0_i32_26 : i32 to vector<8x1xi32>
    %66 = arith.cmpi eq, %64, %65 : vector<8x1xi32>
    %cst_27 = arith.constant 1.000000e+00 : f32
    %cst_28 = arith.constant 0.000000e+00 : f32
    %67 = vector.broadcast %cst_27 : f32 to vector<8x1xf32>
    %68 = vector.broadcast %cst_28 : f32 to vector<8x1xf32>
    %69 = arith.select %66, %67, %68 : vector<8x1xi1>, vector<8x1xf32>
    %c1_i32_29 = arith.constant 1 : i32
    %70 = vector.broadcast %c1_i32_29 : i32 to vector<1x128xi32>
    %71 = arith.andi %9, %70 : vector<1x128xi32>
    %c0_i32_30 = arith.constant 0 : i32
    %72 = vector.broadcast %c0_i32_30 : i32 to vector<1x128xi32>
    %73 = arith.cmpi eq, %71, %72 : vector<1x128xi32>
    %cst_31 = arith.constant 1.000000e+00 : f32
    %cst_32 = arith.constant 0.000000e+00 : f32
    %74 = vector.broadcast %cst_31 : f32 to vector<1x128xf32>
    %75 = vector.broadcast %cst_32 : f32 to vector<1x128xf32>
    %76 = arith.select %73, %74, %75 : vector<1x128xi1>, vector<1x128xf32>
    %77 = vector.broadcast %69 : vector<8x1xf32> to vector<8x128xf32>
    %78 = vector.broadcast %76 : vector<1x128xf32> to vector<8x128xf32>
    %79 = arith.mulf %77, %78 : vector<8x128xf32>
    %80 = arith.mulf %5, %79 : vector<8x128xf32>
    %81 = arith.mulf %6, %80 : vector<8x128xf32>
    %c126_i32 = arith.constant 126 : i32
    %82 = vector.broadcast %c126_i32 : i32 to vector<1x128xi32>
    %83 = arith.cmpi slt, %9, %82 : vector<1x128xi32>
    %cst_33 = arith.constant 1.000000e+00 : f32
    %cst_34 = arith.constant 0.000000e+00 : f32
    %84 = vector.broadcast %cst_33 : f32 to vector<1x128xf32>
    %85 = vector.broadcast %cst_34 : f32 to vector<1x128xf32>
    %86 = arith.select %83, %84, %85 : vector<1x128xi1>, vector<1x128xf32>
    %c126_i32_35 = arith.constant 126 : i32
    %87 = tpu.dynamic_rotate %81 by %c126_i32_35 dim 1 : vector<8x128xf32>, i32 -> vector<8x128xf32>
    %c126_i32_36 = arith.constant 126 : i32
    %88 = tpu.dynamic_rotate %80 by %c126_i32_36 dim 1 : vector<8x128xf32>, i32 -> vector<8x128xf32>
    %89 = vector.broadcast %86 : vector<1x128xf32> to vector<8x128xf32>
    %90 = arith.mulf %88, %89 : vector<8x128xf32>
    %91 = arith.subf %87, %81 : vector<8x128xf32>
    %92 = math.absf %91 : vector<8x128xf32>
    %93 = arith.mulf %90, %80 : vector<8x128xf32>
    %94 = arith.mulf %92, %93 : vector<8x128xf32>
    %c6_i32 = arith.constant 6 : i32
    %95 = vector.broadcast %c6_i32 : i32 to vector<8x1xi32>
    %96 = arith.cmpi slt, %8, %95 : vector<8x1xi32>
    %cst_37 = arith.constant 1.000000e+00 : f32
    %cst_38 = arith.constant 0.000000e+00 : f32
    %97 = vector.broadcast %cst_37 : f32 to vector<8x1xf32>
    %98 = vector.broadcast %cst_38 : f32 to vector<8x1xf32>
    %99 = arith.select %96, %97, %98 : vector<8x1xi1>, vector<8x1xf32>
    %c6_i32_39 = arith.constant 6 : i32
    %100 = tpu.dynamic_rotate %81 by %c6_i32_39 dim 0 : vector<8x128xf32>, i32 -> vector<8x128xf32>
    %c6_i32_40 = arith.constant 6 : i32
    %101 = tpu.dynamic_rotate %80 by %c6_i32_40 dim 0 : vector<8x128xf32>, i32 -> vector<8x128xf32>
    %102 = vector.broadcast %99 : vector<8x1xf32> to vector<8x128xf32>
    %103 = arith.mulf %101, %102 : vector<8x128xf32>
    %104 = arith.subf %100, %81 : vector<8x128xf32>
    %105 = math.absf %104 : vector<8x128xf32>
    %106 = arith.mulf %103, %80 : vector<8x128xf32>
    %107 = arith.mulf %105, %106 : vector<8x128xf32>
    %c1_i32_41 = arith.constant 1 : i32
    %108 = vector.broadcast %c1_i32_41 : i32 to vector<1x4xi32>
    %109 = arith.cmpi eq, %10, %108 : vector<1x4xi32>
    %110 = arith.addf %94, %107 : vector<8x128xf32>
    %111 = vector.shape_cast %110 : vector<8x128xf32> to vector<1x8x128xf32>
    %cst_42 = arith.constant dense<0.000000e+00> : vector<1xf32>
    %112 = vector.multi_reduction <add>, %111, %cst_42 [1, 2] : vector<1x8x128xf32> to vector<1xf32>
    %113 = vector.shape_cast %112 : vector<1xf32> to vector<1x1x1xf32>
    %114 = vector.extract %113[0, 0, 0] : f32 from vector<1x1x1xf32>
    %cst_43 = arith.constant 0.000000e+00 : f32
    %115 = vector.broadcast %114 : f32 to vector<1x4xf32>
    %116 = vector.broadcast %cst_43 : f32 to vector<1x4xf32>
    %117 = arith.select %109, %115, %116 : vector<1x4xi1>, vector<1x4xf32>
    %118 = arith.addf %52, %117 : vector<1x4xf32>
    %c1_i32_44 = arith.constant 1 : i32
    %119 = vector.broadcast %c1_i32_44 : i32 to vector<1x4xi32>
    %120 = arith.cmpi eq, %10, %119 : vector<1x4xi32>
    %121 = vector.shape_cast %80 : vector<8x128xf32> to vector<1x8x128xf32>
    %cst_45 = arith.constant dense<0.000000e+00> : vector<1xf32>
    %122 = vector.multi_reduction <add>, %121, %cst_45 [1, 2] : vector<1x8x128xf32> to vector<1xf32>
    %123 = vector.shape_cast %122 : vector<1xf32> to vector<1x1x1xf32>
    %124 = vector.extract %123[0, 0, 0] : f32 from vector<1x1x1xf32>
    %cst_46 = arith.constant 0.000000e+00 : f32
    %125 = vector.broadcast %124 : f32 to vector<1x4xf32>
    %126 = vector.broadcast %cst_46 : f32 to vector<1x4xf32>
    %127 = arith.select %120, %125, %126 : vector<1x4xi1>, vector<1x4xf32>
    %128 = arith.addf %62, %127 : vector<1x4xf32>
    %c3_i32 = arith.constant 3 : i32
    %129 = vector.broadcast %c3_i32 : i32 to vector<8x1xi32>
    %130 = arith.andi %8, %129 : vector<8x1xi32>
    %c0_i32_47 = arith.constant 0 : i32
    %131 = vector.broadcast %c0_i32_47 : i32 to vector<8x1xi32>
    %132 = arith.cmpi eq, %130, %131 : vector<8x1xi32>
    %cst_48 = arith.constant 1.000000e+00 : f32
    %cst_49 = arith.constant 0.000000e+00 : f32
    %133 = vector.broadcast %cst_48 : f32 to vector<8x1xf32>
    %134 = vector.broadcast %cst_49 : f32 to vector<8x1xf32>
    %135 = arith.select %132, %133, %134 : vector<8x1xi1>, vector<8x1xf32>
    %c3_i32_50 = arith.constant 3 : i32
    %136 = vector.broadcast %c3_i32_50 : i32 to vector<1x128xi32>
    %137 = arith.andi %9, %136 : vector<1x128xi32>
    %c0_i32_51 = arith.constant 0 : i32
    %138 = vector.broadcast %c0_i32_51 : i32 to vector<1x128xi32>
    %139 = arith.cmpi eq, %137, %138 : vector<1x128xi32>
    %cst_52 = arith.constant 1.000000e+00 : f32
    %cst_53 = arith.constant 0.000000e+00 : f32
    %140 = vector.broadcast %cst_52 : f32 to vector<1x128xf32>
    %141 = vector.broadcast %cst_53 : f32 to vector<1x128xf32>
    %142 = arith.select %139, %140, %141 : vector<1x128xi1>, vector<1x128xf32>
    %143 = vector.broadcast %135 : vector<8x1xf32> to vector<8x128xf32>
    %144 = vector.broadcast %142 : vector<1x128xf32> to vector<8x128xf32>
    %145 = arith.mulf %143, %144 : vector<8x128xf32>
    %146 = arith.mulf %5, %145 : vector<8x128xf32>
    %147 = arith.mulf %6, %146 : vector<8x128xf32>
    %c124_i32 = arith.constant 124 : i32
    %148 = vector.broadcast %c124_i32 : i32 to vector<1x128xi32>
    %149 = arith.cmpi slt, %9, %148 : vector<1x128xi32>
    %cst_54 = arith.constant 1.000000e+00 : f32
    %cst_55 = arith.constant 0.000000e+00 : f32
    %150 = vector.broadcast %cst_54 : f32 to vector<1x128xf32>
    %151 = vector.broadcast %cst_55 : f32 to vector<1x128xf32>
    %152 = arith.select %149, %150, %151 : vector<1x128xi1>, vector<1x128xf32>
    %c124_i32_56 = arith.constant 124 : i32
    %153 = tpu.dynamic_rotate %147 by %c124_i32_56 dim 1 : vector<8x128xf32>, i32 -> vector<8x128xf32>
    %c124_i32_57 = arith.constant 124 : i32
    %154 = tpu.dynamic_rotate %146 by %c124_i32_57 dim 1 : vector<8x128xf32>, i32 -> vector<8x128xf32>
    %155 = vector.broadcast %152 : vector<1x128xf32> to vector<8x128xf32>
    %156 = arith.mulf %154, %155 : vector<8x128xf32>
    %157 = arith.subf %153, %147 : vector<8x128xf32>
    %158 = math.absf %157 : vector<8x128xf32>
    %159 = arith.mulf %156, %146 : vector<8x128xf32>
    %160 = arith.mulf %158, %159 : vector<8x128xf32>
    %c4_i32 = arith.constant 4 : i32
    %161 = vector.broadcast %c4_i32 : i32 to vector<8x1xi32>
    %162 = arith.cmpi slt, %8, %161 : vector<8x1xi32>
    %cst_58 = arith.constant 1.000000e+00 : f32
    %cst_59 = arith.constant 0.000000e+00 : f32
    %163 = vector.broadcast %cst_58 : f32 to vector<8x1xf32>
    %164 = vector.broadcast %cst_59 : f32 to vector<8x1xf32>
    %165 = arith.select %162, %163, %164 : vector<8x1xi1>, vector<8x1xf32>
    %c4_i32_60 = arith.constant 4 : i32
    %166 = tpu.dynamic_rotate %147 by %c4_i32_60 dim 0 : vector<8x128xf32>, i32 -> vector<8x128xf32>
    %c4_i32_61 = arith.constant 4 : i32
    %167 = tpu.dynamic_rotate %146 by %c4_i32_61 dim 0 : vector<8x128xf32>, i32 -> vector<8x128xf32>
    %168 = vector.broadcast %165 : vector<8x1xf32> to vector<8x128xf32>
    %169 = arith.mulf %167, %168 : vector<8x128xf32>
    %170 = arith.subf %166, %147 : vector<8x128xf32>
    %171 = math.absf %170 : vector<8x128xf32>
    %172 = arith.mulf %169, %146 : vector<8x128xf32>
    %173 = arith.mulf %171, %172 : vector<8x128xf32>
    %c2_i32 = arith.constant 2 : i32
    %174 = vector.broadcast %c2_i32 : i32 to vector<1x4xi32>
    %175 = arith.cmpi eq, %10, %174 : vector<1x4xi32>
    %176 = arith.addf %160, %173 : vector<8x128xf32>
    %177 = vector.shape_cast %176 : vector<8x128xf32> to vector<1x8x128xf32>
    %cst_62 = arith.constant dense<0.000000e+00> : vector<1xf32>
    %178 = vector.multi_reduction <add>, %177, %cst_62 [1, 2] : vector<1x8x128xf32> to vector<1xf32>
    %179 = vector.shape_cast %178 : vector<1xf32> to vector<1x1x1xf32>
    %180 = vector.extract %179[0, 0, 0] : f32 from vector<1x1x1xf32>
    %cst_63 = arith.constant 0.000000e+00 : f32
    %181 = vector.broadcast %180 : f32 to vector<1x4xf32>
    %182 = vector.broadcast %cst_63 : f32 to vector<1x4xf32>
    %183 = arith.select %175, %181, %182 : vector<1x4xi1>, vector<1x4xf32>
    %184 = arith.addf %118, %183 : vector<1x4xf32>
    %c2_i32_64 = arith.constant 2 : i32
    %185 = vector.broadcast %c2_i32_64 : i32 to vector<1x4xi32>
    %186 = arith.cmpi eq, %10, %185 : vector<1x4xi32>
    %187 = vector.shape_cast %146 : vector<8x128xf32> to vector<1x8x128xf32>
    %cst_65 = arith.constant dense<0.000000e+00> : vector<1xf32>
    %188 = vector.multi_reduction <add>, %187, %cst_65 [1, 2] : vector<1x8x128xf32> to vector<1xf32>
    %189 = vector.shape_cast %188 : vector<1xf32> to vector<1x1x1xf32>
    %190 = vector.extract %189[0, 0, 0] : f32 from vector<1x1x1xf32>
    %cst_66 = arith.constant 0.000000e+00 : f32
    %191 = vector.broadcast %190 : f32 to vector<1x4xf32>
    %192 = vector.broadcast %cst_66 : f32 to vector<1x4xf32>
    %193 = arith.select %186, %191, %192 : vector<1x4xi1>, vector<1x4xf32>
    %194 = arith.addf %128, %193 : vector<1x4xf32>
    %c7_i32_67 = arith.constant 7 : i32
    %195 = vector.broadcast %c7_i32_67 : i32 to vector<8x1xi32>
    %196 = arith.andi %8, %195 : vector<8x1xi32>
    %c0_i32_68 = arith.constant 0 : i32
    %197 = vector.broadcast %c0_i32_68 : i32 to vector<8x1xi32>
    %198 = arith.cmpi eq, %196, %197 : vector<8x1xi32>
    %cst_69 = arith.constant 1.000000e+00 : f32
    %cst_70 = arith.constant 0.000000e+00 : f32
    %199 = vector.broadcast %cst_69 : f32 to vector<8x1xf32>
    %200 = vector.broadcast %cst_70 : f32 to vector<8x1xf32>
    %201 = arith.select %198, %199, %200 : vector<8x1xi1>, vector<8x1xf32>
    %c7_i32_71 = arith.constant 7 : i32
    %202 = vector.broadcast %c7_i32_71 : i32 to vector<1x128xi32>
    %203 = arith.andi %9, %202 : vector<1x128xi32>
    %c0_i32_72 = arith.constant 0 : i32
    %204 = vector.broadcast %c0_i32_72 : i32 to vector<1x128xi32>
    %205 = arith.cmpi eq, %203, %204 : vector<1x128xi32>
    %cst_73 = arith.constant 1.000000e+00 : f32
    %cst_74 = arith.constant 0.000000e+00 : f32
    %206 = vector.broadcast %cst_73 : f32 to vector<1x128xf32>
    %207 = vector.broadcast %cst_74 : f32 to vector<1x128xf32>
    %208 = arith.select %205, %206, %207 : vector<1x128xi1>, vector<1x128xf32>
    %209 = vector.broadcast %201 : vector<8x1xf32> to vector<8x128xf32>
    %210 = vector.broadcast %208 : vector<1x128xf32> to vector<8x128xf32>
    %211 = arith.mulf %209, %210 : vector<8x128xf32>
    %212 = arith.mulf %5, %211 : vector<8x128xf32>
    %213 = arith.mulf %6, %212 : vector<8x128xf32>
    %c120_i32 = arith.constant 120 : i32
    %214 = vector.broadcast %c120_i32 : i32 to vector<1x128xi32>
    %215 = arith.cmpi slt, %9, %214 : vector<1x128xi32>
    %cst_75 = arith.constant 1.000000e+00 : f32
    %cst_76 = arith.constant 0.000000e+00 : f32
    %216 = vector.broadcast %cst_75 : f32 to vector<1x128xf32>
    %217 = vector.broadcast %cst_76 : f32 to vector<1x128xf32>
    %218 = arith.select %215, %216, %217 : vector<1x128xi1>, vector<1x128xf32>
    %c120_i32_77 = arith.constant 120 : i32
    %219 = tpu.dynamic_rotate %213 by %c120_i32_77 dim 1 : vector<8x128xf32>, i32 -> vector<8x128xf32>
    %c120_i32_78 = arith.constant 120 : i32
    %220 = tpu.dynamic_rotate %212 by %c120_i32_78 dim 1 : vector<8x128xf32>, i32 -> vector<8x128xf32>
    %221 = vector.broadcast %218 : vector<1x128xf32> to vector<8x128xf32>
    %222 = arith.mulf %220, %221 : vector<8x128xf32>
    %223 = arith.subf %219, %213 : vector<8x128xf32>
    %224 = math.absf %223 : vector<8x128xf32>
    %225 = arith.mulf %222, %212 : vector<8x128xf32>
    %226 = arith.mulf %224, %225 : vector<8x128xf32>
    %c0_i32_79 = arith.constant 0 : i32
    %227 = vector.broadcast %c0_i32_79 : i32 to vector<8x1xi32>
    %228 = arith.cmpi slt, %8, %227 : vector<8x1xi32>
    %cst_80 = arith.constant 1.000000e+00 : f32
    %cst_81 = arith.constant 0.000000e+00 : f32
    %229 = vector.broadcast %cst_80 : f32 to vector<8x1xf32>
    %230 = vector.broadcast %cst_81 : f32 to vector<8x1xf32>
    %231 = arith.select %228, %229, %230 : vector<8x1xi1>, vector<8x1xf32>
    %c0_i32_82 = arith.constant 0 : i32
    %232 = tpu.dynamic_rotate %213 by %c0_i32_82 dim 0 : vector<8x128xf32>, i32 -> vector<8x128xf32>
    %c0_i32_83 = arith.constant 0 : i32
    %233 = tpu.dynamic_rotate %212 by %c0_i32_83 dim 0 : vector<8x128xf32>, i32 -> vector<8x128xf32>
    %234 = vector.broadcast %231 : vector<8x1xf32> to vector<8x128xf32>
    %235 = arith.mulf %233, %234 : vector<8x128xf32>
    %236 = arith.subf %232, %213 : vector<8x128xf32>
    %237 = math.absf %236 : vector<8x128xf32>
    %238 = arith.mulf %235, %212 : vector<8x128xf32>
    %239 = arith.mulf %237, %238 : vector<8x128xf32>
    %c3_i32_84 = arith.constant 3 : i32
    %240 = vector.broadcast %c3_i32_84 : i32 to vector<1x4xi32>
    %241 = arith.cmpi eq, %10, %240 : vector<1x4xi32>
    %242 = arith.addf %226, %239 : vector<8x128xf32>
    %243 = vector.shape_cast %242 : vector<8x128xf32> to vector<1x8x128xf32>
    %cst_85 = arith.constant dense<0.000000e+00> : vector<1xf32>
    %244 = vector.multi_reduction <add>, %243, %cst_85 [1, 2] : vector<1x8x128xf32> to vector<1xf32>
    %245 = vector.shape_cast %244 : vector<1xf32> to vector<1x1x1xf32>
    %246 = vector.extract %245[0, 0, 0] : f32 from vector<1x1x1xf32>
    %cst_86 = arith.constant 0.000000e+00 : f32
    %247 = vector.broadcast %246 : f32 to vector<1x4xf32>
    %248 = vector.broadcast %cst_86 : f32 to vector<1x4xf32>
    %249 = arith.select %241, %247, %248 : vector<1x4xi1>, vector<1x4xf32>
    %250 = arith.addf %184, %249 : vector<1x4xf32>
    %c3_i32_87 = arith.constant 3 : i32
    %251 = vector.broadcast %c3_i32_87 : i32 to vector<1x4xi32>
    %252 = arith.cmpi eq, %10, %251 : vector<1x4xi32>
    %253 = vector.shape_cast %212 : vector<8x128xf32> to vector<1x8x128xf32>
    %cst_88 = arith.constant dense<0.000000e+00> : vector<1xf32>
    %254 = vector.multi_reduction <add>, %253, %cst_88 [1, 2] : vector<1x8x128xf32> to vector<1xf32>
    %255 = vector.shape_cast %254 : vector<1xf32> to vector<1x1x1xf32>
    %256 = vector.extract %255[0, 0, 0] : f32 from vector<1x1x1xf32>
    %cst_89 = arith.constant 0.000000e+00 : f32
    %257 = vector.broadcast %256 : f32 to vector<1x4xf32>
    %258 = vector.broadcast %cst_89 : f32 to vector<1x4xf32>
    %259 = arith.select %252, %257, %258 : vector<1x4xi1>, vector<1x4xf32>
    %260 = arith.addf %194, %259 : vector<1x4xf32>
    %c0_90 = arith.constant 0 : index
    %c0_91 = arith.constant 0 : index
    %261 = vector.load %arg7[%c0_90, %c0_91] : memref<1x4xf32, #tpu.memory_space<vmem>>, vector<1x4xf32>
    tpu.vector_store %arg7[%c0_90, %c0_91], %250 {strides = array<i32>} : memref<1x4xf32, #tpu.memory_space<vmem>>, vector<1x4xf32>,
    %c0_92 = arith.constant 0 : index
    %c0_93 = arith.constant 0 : index
    %262 = vector.load %arg8[%c0_92, %c0_93] : memref<1x4xf32, #tpu.memory_space<vmem>>, vector<1x4xf32>
    tpu.vector_store %arg8[%c0_92, %c0_93], %260 {strides = array<i32>} : memref<1x4xf32, #tpu.memory_space<vmem>>, vector<1x4xf32>,
    %c0_i32_94 = arith.constant 0 : i32
    %263 = arith.cmpi sgt, %arg1, %c0_i32_94 : i32
    %264 = arith.extui %263 : i1 to i32
    %c0_i32_95 = arith.constant 0 : i32
    %265 = arith.cmpi ne, %264, %c0_i32_95 : i32
    scf.if %265 {
      %271 = vector.extract_strided_slice %7 {offsets = [0, 0], sizes = [1, 128], strides = [1, 1]} : vector<8x128xf32> to vector<1x128xf32>
      %272 = vector.extract_strided_slice %5 {offsets = [0, 0], sizes = [1, 128], strides = [1, 1]} : vector<8x128xf32> to vector<1x128xf32>
      %c0_102 = arith.constant 0 : index
      %c0_103 = arith.constant 0 : index
      %273 = vector.load %arg7[%c0_102, %c0_103] : memref<1x4xf32, #tpu.memory_space<vmem>>, vector<1x4xf32>
      %c7 = arith.constant 7 : index
      %c0_104 = arith.constant 0 : index
      %274 = vector.load %arg9[%c7, %c0_104] : memref<8x128xf32, #tpu.memory_space<vmem>>, vector<1x128xf32>
      %c7_105 = arith.constant 7 : index
      %c0_106 = arith.constant 0 : index
      %275 = vector.load %arg10[%c7_105, %c0_106] : memref<8x128xf32, #tpu.memory_space<vmem>>, vector<1x128xf32>
      %c0_i32_107 = arith.constant 0 : i32
      %276 = vector.broadcast %c0_i32_107 : i32 to vector<1x128xi32>
      %277 = arith.andi %9, %276 : vector<1x128xi32>
      %c0_i32_108 = arith.constant 0 : i32
      %278 = vector.broadcast %c0_i32_108 : i32 to vector<1x128xi32>
      %279 = arith.cmpi eq, %277, %278 : vector<1x128xi32>
      %cst_109 = arith.constant 1.000000e+00 : f32
      %cst_110 = arith.constant 0.000000e+00 : f32
      %280 = vector.broadcast %cst_109 : f32 to vector<1x128xf32>
      %281 = vector.broadcast %cst_110 : f32 to vector<1x128xf32>
      %282 = arith.select %279, %280, %281 : vector<1x128xi1>, vector<1x128xf32>
      %c0_i32_111 = arith.constant 0 : i32
      %283 = vector.broadcast %c0_i32_111 : i32 to vector<1x4xi32>
      %284 = arith.cmpi eq, %10, %283 : vector<1x4xi32>
      %285 = arith.subf %271, %274 : vector<1x128xf32>
      %286 = math.absf %285 : vector<1x128xf32>
      %287 = arith.mulf %272, %275 : vector<1x128xf32>
      %288 = arith.mulf %287, %282 : vector<1x128xf32>
      %289 = arith.mulf %286, %288 : vector<1x128xf32>
      %290 = vector.shape_cast %289 : vector<1x128xf32> to vector<1x1x128xf32>
      %cst_112 = arith.constant dense<0.000000e+00> : vector<1xf32>
      %291 = vector.multi_reduction <add>, %290, %cst_112 [1, 2] : vector<1x1x128xf32> to vector<1xf32>
      %292 = vector.shape_cast %291 : vector<1xf32> to vector<1x1x1xf32>
      %293 = vector.extract %292[0, 0, 0] : f32 from vector<1x1x1xf32>
      %cst_113 = arith.constant 0.000000e+00 : f32
      %294 = vector.broadcast %293 : f32 to vector<1x4xf32>
      %295 = vector.broadcast %cst_113 : f32 to vector<1x4xf32>
      %296 = arith.select %284, %294, %295 : vector<1x4xi1>, vector<1x4xf32>
      %297 = arith.addf %273, %296 : vector<1x4xf32>
      %c6 = arith.constant 6 : index
      %c0_114 = arith.constant 0 : index
      %298 = vector.load %arg9[%c6, %c0_114] : memref<8x128xf32, #tpu.memory_space<vmem>>, vector<1x128xf32>
      %c6_115 = arith.constant 6 : index
      %c0_116 = arith.constant 0 : index
      %299 = vector.load %arg10[%c6_115, %c0_116] : memref<8x128xf32, #tpu.memory_space<vmem>>, vector<1x128xf32>
      %c1_i32_117 = arith.constant 1 : i32
      %300 = vector.broadcast %c1_i32_117 : i32 to vector<1x128xi32>
      %301 = arith.andi %9, %300 : vector<1x128xi32>
      %c0_i32_118 = arith.constant 0 : i32
      %302 = vector.broadcast %c0_i32_118 : i32 to vector<1x128xi32>
      %303 = arith.cmpi eq, %301, %302 : vector<1x128xi32>
      %cst_119 = arith.constant 1.000000e+00 : f32
      %cst_120 = arith.constant 0.000000e+00 : f32
      %304 = vector.broadcast %cst_119 : f32 to vector<1x128xf32>
      %305 = vector.broadcast %cst_120 : f32 to vector<1x128xf32>
      %306 = arith.select %303, %304, %305 : vector<1x128xi1>, vector<1x128xf32>
      %c1_i32_121 = arith.constant 1 : i32
      %307 = vector.broadcast %c1_i32_121 : i32 to vector<1x4xi32>
      %308 = arith.cmpi eq, %10, %307 : vector<1x4xi32>
      %309 = arith.subf %271, %298 : vector<1x128xf32>
      %310 = math.absf %309 : vector<1x128xf32>
      %311 = arith.mulf %272, %299 : vector<1x128xf32>
      %312 = arith.mulf %311, %306 : vector<1x128xf32>
      %313 = arith.mulf %310, %312 : vector<1x128xf32>
      %314 = vector.shape_cast %313 : vector<1x128xf32> to vector<1x1x128xf32>
      %cst_122 = arith.constant dense<0.000000e+00> : vector<1xf32>
      %315 = vector.multi_reduction <add>, %314, %cst_122 [1, 2] : vector<1x1x128xf32> to vector<1xf32>
      %316 = vector.shape_cast %315 : vector<1xf32> to vector<1x1x1xf32>
      %317 = vector.extract %316[0, 0, 0] : f32 from vector<1x1x1xf32>
      %cst_123 = arith.constant 0.000000e+00 : f32
      %318 = vector.broadcast %317 : f32 to vector<1x4xf32>
      %319 = vector.broadcast %cst_123 : f32 to vector<1x4xf32>
      %320 = arith.select %308, %318, %319 : vector<1x4xi1>, vector<1x4xf32>
      %321 = arith.addf %297, %320 : vector<1x4xf32>
      %c4 = arith.constant 4 : index
      %c0_124 = arith.constant 0 : index
      %322 = vector.load %arg9[%c4, %c0_124] : memref<8x128xf32, #tpu.memory_space<vmem>>, vector<1x128xf32>
      %c4_125 = arith.constant 4 : index
      %c0_126 = arith.constant 0 : index
      %323 = vector.load %arg10[%c4_125, %c0_126] : memref<8x128xf32, #tpu.memory_space<vmem>>, vector<1x128xf32>
      %c3_i32_127 = arith.constant 3 : i32
      %324 = vector.broadcast %c3_i32_127 : i32 to vector<1x128xi32>
      %325 = arith.andi %9, %324 : vector<1x128xi32>
      %c0_i32_128 = arith.constant 0 : i32
      %326 = vector.broadcast %c0_i32_128 : i32 to vector<1x128xi32>
      %327 = arith.cmpi eq, %325, %326 : vector<1x128xi32>
      %cst_129 = arith.constant 1.000000e+00 : f32
      %cst_130 = arith.constant 0.000000e+00 : f32
      %328 = vector.broadcast %cst_129 : f32 to vector<1x128xf32>
      %329 = vector.broadcast %cst_130 : f32 to vector<1x128xf32>
      %330 = arith.select %327, %328, %329 : vector<1x128xi1>, vector<1x128xf32>
      %c2_i32_131 = arith.constant 2 : i32
      %331 = vector.broadcast %c2_i32_131 : i32 to vector<1x4xi32>
      %332 = arith.cmpi eq, %10, %331 : vector<1x4xi32>
      %333 = arith.subf %271, %322 : vector<1x128xf32>
      %334 = math.absf %333 : vector<1x128xf32>
      %335 = arith.mulf %272, %323 : vector<1x128xf32>
      %336 = arith.mulf %335, %330 : vector<1x128xf32>
      %337 = arith.mulf %334, %336 : vector<1x128xf32>
      %338 = vector.shape_cast %337 : vector<1x128xf32> to vector<1x1x128xf32>
      %cst_132 = arith.constant dense<0.000000e+00> : vector<1xf32>
      %339 = vector.multi_reduction <add>, %338, %cst_132 [1, 2] : vector<1x1x128xf32> to vector<1xf32>
      %340 = vector.shape_cast %339 : vector<1xf32> to vector<1x1x1xf32>
      %341 = vector.extract %340[0, 0, 0] : f32 from vector<1x1x1xf32>
      %cst_133 = arith.constant 0.000000e+00 : f32
      %342 = vector.broadcast %341 : f32 to vector<1x4xf32>
      %343 = vector.broadcast %cst_133 : f32 to vector<1x4xf32>
      %344 = arith.select %332, %342, %343 : vector<1x4xi1>, vector<1x4xf32>
      %345 = arith.addf %321, %344 : vector<1x4xf32>
      %c0_134 = arith.constant 0 : index
      %c0_135 = arith.constant 0 : index
      %346 = vector.load %arg9[%c0_134, %c0_135] : memref<8x128xf32, #tpu.memory_space<vmem>>, vector<1x128xf32>
      %c0_136 = arith.constant 0 : index
      %c0_137 = arith.constant 0 : index
      %347 = vector.load %arg10[%c0_136, %c0_137] : memref<8x128xf32, #tpu.memory_space<vmem>>, vector<1x128xf32>
      %c7_i32_138 = arith.constant 7 : i32
      %348 = vector.broadcast %c7_i32_138 : i32 to vector<1x128xi32>
      %349 = arith.andi %9, %348 : vector<1x128xi32>
      %c0_i32_139 = arith.constant 0 : i32
      %350 = vector.broadcast %c0_i32_139 : i32 to vector<1x128xi32>
      %351 = arith.cmpi eq, %349, %350 : vector<1x128xi32>
      %cst_140 = arith.constant 1.000000e+00 : f32
      %cst_141 = arith.constant 0.000000e+00 : f32
      %352 = vector.broadcast %cst_140 : f32 to vector<1x128xf32>
      %353 = vector.broadcast %cst_141 : f32 to vector<1x128xf32>
      %354 = arith.select %351, %352, %353 : vector<1x128xi1>, vector<1x128xf32>
      %c3_i32_142 = arith.constant 3 : i32
      %355 = vector.broadcast %c3_i32_142 : i32 to vector<1x4xi32>
      %356 = arith.cmpi eq, %10, %355 : vector<1x4xi32>
      %357 = arith.subf %271, %346 : vector<1x128xf32>
      %358 = math.absf %357 : vector<1x128xf32>
      %359 = arith.mulf %272, %347 : vector<1x128xf32>
      %360 = arith.mulf %359, %354 : vector<1x128xf32>
      %361 = arith.mulf %358, %360 : vector<1x128xf32>
      %362 = vector.shape_cast %361 : vector<1x128xf32> to vector<1x1x128xf32>
      %cst_143 = arith.constant dense<0.000000e+00> : vector<1xf32>
      %363 = vector.multi_reduction <add>, %362, %cst_143 [1, 2] : vector<1x1x128xf32> to vector<1xf32>
      %364 = vector.shape_cast %363 : vector<1xf32> to vector<1x1x1xf32>
      %365 = vector.extract %364[0, 0, 0] : f32 from vector<1x1x1xf32>
      %cst_144 = arith.constant 0.000000e+00 : f32
      %366 = vector.broadcast %365 : f32 to vector<1x4xf32>
      %367 = vector.broadcast %cst_144 : f32 to vector<1x4xf32>
      %368 = arith.select %356, %366, %367 : vector<1x4xi1>, vector<1x4xf32>
      %369 = arith.addf %345, %368 : vector<1x4xf32>
      %c0_145 = arith.constant 0 : index
      %c0_146 = arith.constant 0 : index
      %370 = vector.load %arg7[%c0_145, %c0_146] : memref<1x4xf32, #tpu.memory_space<vmem>>, vector<1x4xf32>
      tpu.vector_store %arg7[%c0_145, %c0_146], %369 {strides = array<i32>} : memref<1x4xf32, #tpu.memory_space<vmem>>, vector<1x4xf32>,
    } else {
    }
    %c0_96 = arith.constant 0 : index
    %c0_97 = arith.constant 0 : index
    %266 = vector.load %arg9[%c0_96, %c0_97] : memref<8x128xf32, #tpu.memory_space<vmem>>, vector<8x128xf32>
    tpu.vector_store %arg9[%c0_96, %c0_97], %7 {strides = array<i32>} : memref<8x128xf32, #tpu.memory_space<vmem>>, vector<8x128xf32>,
    %c0_98 = arith.constant 0 : index
    %c0_99 = arith.constant 0 : index
    %267 = vector.load %arg10[%c0_98, %c0_99] : memref<8x128xf32, #tpu.memory_space<vmem>>, vector<8x128xf32>
    tpu.vector_store %arg10[%c0_98, %c0_99], %5 {strides = array<i32>} : memref<8x128xf32, #tpu.memory_space<vmem>>, vector<8x128xf32>,
    %c1_i32_100 = arith.constant 1 : i32
    %268 = arith.cmpi eq, %arg1, %c1_i32_100 : i32
    %269 = arith.extui %268 : i1 to i32
    %c0_i32_101 = arith.constant 0 : i32
    %270 = arith.cmpi ne, %269, %c0_i32_101 : i32
    scf.if %270 {
      %c0_102 = arith.constant 0 : index
      %c0_103 = arith.constant 0 : index
      %271 = vector.load %arg7[%c0_102, %c0_103] : memref<1x4xf32, #tpu.memory_space<vmem>>, vector<1x4xf32>
      %c0_104 = arith.constant 0 : index
      %c0_105 = arith.constant 0 : index
      %c0_106 = arith.constant 0 : index
      %272 = vector.load %arg5[%c0_104, %c0_105, %c0_106] : memref<1x1x4xf32, #tpu.memory_space<vmem>>, vector<1x1x4xf32>
      %273 = vector.shape_cast %272 : vector<1x1x4xf32> to vector<1x4xf32>
      %274 = vector.shape_cast %271 : vector<1x4xf32> to vector<1x1x4xf32>
      tpu.vector_store %arg5[%c0_104, %c0_105, %c0_106], %274 {strides = array<i32>} : memref<1x1x4xf32, #tpu.memory_space<vmem>>, vector<1x1x4xf32>,
      %c0_107 = arith.constant 0 : index
      %c0_108 = arith.constant 0 : index
      %275 = vector.load %arg8[%c0_107, %c0_108] : memref<1x4xf32, #tpu.memory_space<vmem>>, vector<1x4xf32>
      %c0_109 = arith.constant 0 : index
      %c0_110 = arith.constant 0 : index
      %c0_111 = arith.constant 0 : index
      %276 = vector.load %arg6[%c0_109, %c0_110, %c0_111] : memref<1x1x4xf32, #tpu.memory_space<vmem>>, vector<1x1x4xf32>
      %277 = vector.shape_cast %276 : vector<1x1x4xf32> to vector<1x4xf32>
      %278 = vector.shape_cast %275 : vector<1x4xf32> to vector<1x1x4xf32>
      tpu.vector_store %arg6[%c0_109, %c0_110, %c0_111], %278 {strides = array<i32>} : memref<1x1x4xf32, #tpu.memory_space<vmem>>, vector<1x1x4xf32>,
    } else {
    }
    return
  }
  func.func @transform_0(%arg0: i32, %arg1: i32) -> (i32, i32, i32) {
    %c0_i32 = arith.constant 0 : i32
    %c0_i32_0 = arith.constant 0 : i32
    return %arg0, %arg1, %c0_i32 : i32, i32, i32
  }
  func.func @transform_1(%arg0: i32, %arg1: i32) -> (i32, i32, i32) {
    %c0_i32 = arith.constant 0 : i32
    %c0_i32_0 = arith.constant 0 : i32
    return %arg0, %arg1, %c0_i32 : i32, i32, i32
  }
  func.func @transform_2(%arg0: i32, %arg1: i32) -> (i32, i32, i32) {
    %c0_i32 = arith.constant 0 : i32
    %c0_i32_0 = arith.constant 0 : i32
    return %arg0, %arg1, %c0_i32 : i32, i32, i32
  }
  func.func @transform_3(%arg0: i32, %arg1: i32) -> (i32, i32, i32) {
    %c0_i32 = arith.constant 0 : i32
    %c0_i32_0 = arith.constant 0 : i32
    %c0_i32_1 = arith.constant 0 : i32
    return %arg0, %c0_i32, %c0_i32_0 : i32, i32, i32
  }
  func.func @transform_4(%arg0: i32, %arg1: i32) -> (i32, i32, i32) {
    %c0_i32 = arith.constant 0 : i32
    %c0_i32_0 = arith.constant 0 : i32
    %c0_i32_1 = arith.constant 0 : i32
    return %arg0, %c0_i32, %c0_i32_0 : i32, i32, i32
  }
}

</mosaic_0001>

<bundles_post_ra>
// kernel: gradient_loss_forward.1
= control target key start
LH: loop header
LB: loop body
LE: loop exit
PB: predicated region body
PF: predicated region fallthrough
CT: control target
= control target key end

     0   :  { %s1437_s0 = inlined_call_operand.hbm [shape: f32[2,16,128], index: 0, kind: input, shape index: {}]   ;;  %s1438_s1 = inlined_call_operand.hbm [shape: f32[2,16,128], index: 1, kind: input, shape index: {}]   ;;  %s1439_s2 = inlined_call_operand.hbm [shape: f32[2,16,128], index: 2, kind: input, shape index: {}]   ;;  %s1440_s3 = inlined_call_operand.vmem [shape: f32[2,1,4], index: 3, kind: output, shape index: {0}]   ;;  %s1441_s4 = inlined_call_operand.vmem [shape: f32[2,1,4], index: 4, kind: output, shape index: {1}]  }
   0x1   :  { %1443 = sst [smem:[#allocation13_spill]] %s1437_s0 }
   0x2   :  { %1444 = sst [smem:[#allocation14_spill]] %s1438_s1 }
   0x3   :  { %10 = vsyncpa [#allocation7], 0 }
   0x4   :  { %12 = vsyncpa [#allocation7 + $0x1], 0 }
   0x5   :  { %13 = vsyncpa [#allocation9], 0 }
   0x6   :  { %15 = vsyncpa [#allocation9 + $0x1], 0  ;;  %s1108_s15 = smov 0   ;;  %s1110_s16 = smov 0  }
   0x7   :  { %s1112_s17 = smov 0   ;;  %s1114_s18 = smov 0  }
   0x8   :  { %s1116_s19 = smov 0   ;;  %s1118_s20 = smov 0  }
   0x9   :  { %s1120_s21 = smov 0   ;;  %s1122_s22 = smov 0  }
   0xa LB: > { %s1442_s23 = sadd.s32 4294967295, %s1072_s22   ;;  %s30_s24 = sadd.s32 1, %s1064_s20  ;;  %s1072_s22 = sphi %s1122_s22, %s21_s22   ;;  %s1068_s21 = sphi %s1120_s21, %s1457_s21   ;;  %s1064_s20 = sphi %s1118_s20, %s1456_s20   ;;  %s1060_s19 = sphi %s1116_s19, %s1455_s19   ;;  %s1056_s18 = sphi %s1114_s18, %s1454_s18   ;;  %s1052_s17 = sphi %s1112_s17, %s1453_s17   ;;  %s1048_s16 = sphi %s1110_s16, %s1452_s16   ;;  %s1044_s15 = sphi %s1108_s15, %s1451_s15  }
   0xb   : > { %p31_p0 = scmp.ge.s32.totalorder %s30_s24, 2  ;;  %s33_s25 = sadd.s32 1, %s1068_s21 }
   0xc   : > { %s42_s26 = sadd.s32 1, %s1052_s17  ;;  %p49_p1 = scmp.ne.s32.totalorder %s1052_s17, %s1048_s16 }
   0xd   : > { %s1459_s24 = smov (%p31_p0, %s30_s24), 0  ;;  %s1461_s25 = smov (!%p31_p0, %s33_s25), %s1068_s21 }
   0xe   : > { %s38_s27 = ssub.s32 %s1064_s20, %s1459_s24  ;;  %p50_p2 = scmp.eq.s32.totalorder %s1072_s22, 0 }
   0xf   : > { %p35_p3 = scmp.ge.s32.totalorder %s1461_s25, 2  ;;  %p55_p4 = scmp.ne.s32.totalorder %s1048_s16, %s1044_s15 }
  0x10   : > { %p51_p5 = por %p50_p2, %p49_p1  ;;  %p56_p6 = scmp.eq.s32.totalorder %s1442_s23, 0 }
  0x11   : > { %s1463_s25 = smov (%p35_p3, %s1461_s25), 0  ;;  %p847_p8 = scmp.lt.s32.totalorder %s1072_s22, 4 }
  0x12   : > { %p1163_p7 = por %p56_p6, %p55_p4  ;;  %s37_s29 = ssub.s32 %s1068_s21, %s1463_s25 }
  0x13   : > { %s39_s30 = sor.u32 %s38_s27, %s37_s29  ;;  %s187_s5 = sand.u32 1, %s1052_s17  }
  0x14   : > { %p40_p9 = scmp.eq.s32.totalorder %s39_s30, 0  ;;  %s1173_s6 = sshll.u32 %s187_s5, 3 }
  0x15   : > { %s790_s7 = sshll.u32 %s1068_s21, 1  ;;  %p1176_p10 = pnand %p847_p8, %p51_p5 }
  0x16   : > { %s1181_s9 = scalar_select %p40_p9, %s1052_s17, %s42_s26  }
  0x17   : > { %s196_s10 = sadd.s32 %s1064_s20, %s790_s7  ;;  %s207_s12 = sand.u32 1, %s1072_s22  }
  0x18   : > { %s1184_s11 = sshll.u32 %s196_s10, 7  ;;  %s1447_s1 = sld [smem:[#allocation14_spill]] }
  0x19   : > { %s211_s27 = scalar_lea.vmem [#allocation8], %s1173_s6  ;;  %p798_p11 = scmp.ge.s32.totalorder %s1072_s22, 1 }
  0x1a   : > { %s220_s29 = sshll.u32 %s211_s27, 4  ;;  %s1193_s30 = scalar_lea.sflag [#allocation9], %s207_s12  ;;  %s221_s29 = int_to_ptr.vmem [resolvable:$true] %s220_s29 }
  0x1b   : > { %p920_p12 = pneg %p1176_p10  ;;  %s931_s23 = scalar_lea.vmem %s221_s29, 128 }
  0x1c   : > { %p932_p13 = scmp.ne.s32.totalorder %s221_s29, %s931_s23  ;;  %s1074_s26 = smov [#allocation8]  }
  0x1d   : > { %s936_s7 = sshll.u32 %s1074_s26, 4  ;;  %s937_s7 = int_to_ptr.vmem [resolvable:$false] %s936_s7 }
  0x1e   : > { %s218_s15 = scalar_lea.hbm %s1447_s1, %s1184_s11  ;;  %p934_p0 = pnand %p932_p13, %p920_p12 }
  0x1f   : > { %s938_s10 = scalar_lea.vmem %s937_s7, 256  ;;  %p939_p2 = scmp.lt.s32.totalorder %s221_s29, %s937_s7 }
  0x20   : > { %p935_p1 = pneg %p934_p0  ;;  %p940_p3 = scmp.lt.s32.totalorder %s938_s10, %s931_s23 }
  0x22   : > { %p941_p4 = por %p940_p3, %p939_p2 }
  0x24   : > { %p942_p5 = pnand %p941_p4, %p935_p1 }
  0x26   : > { %945 = shalt.err (!%p942_p5)
}
  0x27   : > { %843 = dma.hbm_to_vmem [thread:$0]  (!%p1176_p10), %s218_s15, 128, %s221_s29, %s1193_s30  }
  0x28   : > { %p245_p6 = scmp.lt.s32.totalorder %s1072_s22, 5  ;;  %s1449_s0 = sld [smem:[#allocation13_spill]] }
  0x29   : > { %s191_s27 = scalar_lea.vmem [#allocation6], %s1173_s6  ;;  %s188_s7 = scalar_lea.sflag [#allocation7], %s187_s5 }
  0x2a   : > { %p1206_p8 = pnand %p798_p11, %p245_p6  ;;  %s200_s26 = sshll.u32 %s191_s27, 4  ;;  %s201_s26 = int_to_ptr.vmem [resolvable:$true] %s200_s26 }
  0x2b   : > { %s959_s10 = scalar_lea.vmem %s201_s26, 128  ;;  %s1075_s15 = smov [#allocation6]  }
  0x2c   : > { %p960_p9 = scmp.ne.s32.totalorder %s201_s26, %s959_s10  ;;  %s964_s29 = sshll.u32 %s1075_s15, 4  ;;  %s965_s29 = int_to_ptr.vmem [resolvable:$false] %s964_s29 }
  0x2d   : > { %s966_s1 = scalar_lea.vmem %s965_s29, 256  ;;  %p967_p11 = scmp.lt.s32.totalorder %s201_s26, %s965_s29 }
  0x2e   : > { %s198_s14 = scalar_lea.hbm %s1449_s0, %s1184_s11  ;;  %p962_p13 = pnand %p960_p9, %p920_p12 }
  0x2f   : > { %p968_p1 = scmp.lt.s32.totalorder %s966_s1, %s959_s10 }
  0x30   : > { %p963_p0 = pneg %p962_p13 }
  0x31   : > { %p969_p2 = por %p968_p1, %p967_p11 }
  0x33   : > { %p970_p3 = pnand %p969_p2, %p963_p0 }
  0x35   : > { %973 = shalt.err (!%p970_p3)
}
  0x36   : > { %840 = dma.hbm_to_vmem [thread:$0]  (!%p1176_p10), %s198_s14, 128, %s201_s26, %s188_s7  }
  0x37   : > { %s238_s13 = scalar_lea.hbm %s1439_s2, %s1184_s11  ;;  %s231_s27 = scalar_lea.vmem [#allocation10], %s1173_s6 }
  0x38   : > { %s240_s0 = sshll.u32 %s231_s27, 4  ;;  %s1076_s1 = smov [#allocation10]   ;;  %s241_s0 = int_to_ptr.vmem [resolvable:$true] %s240_s0 }
  0x39   : > { %s987_s15 = scalar_lea.vmem %s241_s0, 128  ;;  %s992_s10 = sshll.u32 %s1076_s1, 4  ;;  %s993_s10 = int_to_ptr.vmem [resolvable:$false] %s992_s10 }
  0x3a   : > { %p988_p4 = scmp.ne.s32.totalorder %s241_s0, %s987_s15  ;;  %s994_s29 = scalar_lea.vmem %s993_s10, 256 }
  0x3b   : > { %p995_p9 = scmp.lt.s32.totalorder %s241_s0, %s993_s10  ;;  %p996_p13 = scmp.lt.s32.totalorder %s994_s29, %s987_s15 }
  0x3c   : > { %p990_p5 = pnand %p988_p4, %p920_p12 }
  0x3d   : > { %p997_p0 = por %p996_p13, %p995_p9 }
  0x3e   : > { %p991_p6 = pneg %p990_p5 }
  0x40   : > { %p998_p11 = pnand %p997_p0, %p991_p6 }
  0x42   : > { %1001 = shalt.err (!%p998_p11)
}
  0x43   : > { %846 = dma.hbm_to_vmem [thread:$0]  (!%p1176_p10), %s238_s13, 128, %s241_s0, %s1193_s30  }
  0x44   : > { %249 = sbr.rel (%p1206_p8) target bundleno = 668 (0x29c), region = 32  ;;  %s251_s6 = sand.u32 (!%p1206_p8), 1, %s1048_s16  }
  0x45   : > { %s799_s11 = sshll.u32 (!%p1206_p8), %s251_s6, 3  ;;  %s252_s14 = scalar_lea.sflag (!%p1206_p8), [#allocation7], %s251_s6 }
  0x46   : > { %s255_s26 = scalar_lea.vmem (!%p1206_p8), [#allocation6], %s799_s11 }
  0x49   : > { %1035 = dma.done.wait (%p1163_p7), %s252_s14, 128  }
  0x4a   : > { %1037 = vsyncadd (%p1163_p7), %s252_s14, 4294967168  ;;  %s1450_s7 = sadd.s32 4294967295, %s1072_s22   ;;  %s264_s0 = scalar_lea.vmem [#allocation8], %s799_s11 }
  0x4b   : > { %s260_s8 = sand.u32 1, %s1450_s7  }
  0x4c   : > { %s261_s5 = scalar_lea.sflag [#allocation9], %s260_s8 }
  0x4d   : > { %1039 = dma.done.wait (%p1163_p7), %s261_s5, 256  }
  0x4e   : > { %1041 = vsyncadd (%p1163_p7), %s261_s5, 4294967040  ;;  %p309_p10 = scmp.lt.s32.totalorder %s1060_s19, 1  ;;  %v320_v0 = vlaneseq  ;;  %v315_v3 = vld [vmem:[%s255_s26] sm:$0xff]  ;;  %v316_v4 = vld [vmem:[%s264_s0] sm:$0xff]  ;;  %s273_s15 = scalar_lea.vmem [#allocation10], %s799_s11 }
  0x4f   : > { %v1262_v5 = vld [vmem:[%s273_s15] sm:$0xff]  ;;  %v318_v6 = vsub.f32 %v315_v3, %v316_v4  ;;  %p802_p7 = scmp.ne.s32.totalorder %s1056_s18, 0 }
  0x50   : > { %s1465_s19 = smov (!%p309_p10, %s1060_s19), 1  ;;  %v1250_v1 = vshrl.u32 %v320_v0, 7  ;;  %v1252_v2 = vand.u32 127, %v320_v0 }
  0x51   : > { %s311_s23 = scalar_lea.vmem %s1440_s3, %s1465_s19  ;;  %s314_s28 = scalar_lea.vmem %s1441_s4, %s1465_s19  ;;  %v1265_v7 = vmul.f32 %v318_v6, %v1262_v5 }
  0x52   : > { %327 = sbr.rel (%p802_p7) target bundleno = 89 (0x59), region = 48 }
  0x57   : > { %vm328_vm0 = vcmask 24576   ;;  %v1077_v8 = vmov 0.0  }
  0x58   : > { %329 = vst.msk [vmem:[#allocation2] sm:$0x1] %vm328_vm0, %v1077_v8  ;;  %330 = vst.msk [vmem:[#allocation3] sm:$0x1] %vm328_vm0, %v1077_v8 }
  0x59 PF: > { %v379_v9 = vand.u32 1, %v1250_v1  ;;  %v382_v10 = vand.u32 1, %v1252_v2  ;;  %v434_v11 = vand.u32 3, %v1250_v1  ;;  %s1078_s1 = smov 127   ;;  %v437_v12 = vand.u32 3, %v1252_v2  ;;  %s1080_s10 = smov 126  }
  0x5a   : > { %335 = vrot.lane.b32.xlu0 %v1265_v7, %s1078_s1  ;;  %v489_v13 = vand.u32 7, %v1250_v1  ;;  %v492_v14 = vand.u32 7, %v1252_v2  ;;  %v1079_v15 = vmov 0.0   ;;  %s1081_s29 = smov 124   ;;  %s1082_s6 = smov 120   ;;  %vm344_vm7 = vcmp.lt.s32.totalorder %v1250_v1, 7 }
  0x5b   : > { %vm380_vm1 = vcmp.eq.s32.totalorder %v379_v9, 0  ;;  %vm383_vm2 = vcmp.eq.s32.totalorder %v382_v10, 0  ;;  %vm435_vm3 = vcmp.eq.s32.totalorder %v434_v11, 0  ;;  %vm438_vm4 = vcmp.eq.s32.totalorder %v437_v12, 0  ;;  %p803_p12 = scmp.le.s32.totalorder %s1056_s18, 0 }
  0x5c   : > { %v381_v16 = vsel %vm380_vm1, 1.0, %v1079_v15  ;;  %v1277_v17 = vsel %vm383_vm2, 1.0, %v1079_v15  ;;  %v436_v18 = vsel %vm435_vm3, 1.0, %v1079_v15  ;;  %v1282_v20 = vsel %vm438_vm4, 1.0, %v1079_v15 }
  0x5d   : > { %v385_v19 = vmul.f32 %v1277_v17, %v381_v16  ;;  %vm490_vm5 = vcmp.eq.s32.totalorder %v489_v13, 0  ;;  %vm493_vm6 = vcmp.eq.s32.totalorder %v492_v14, 0  ;;  %v440_v21 = vmul.f32 %v1282_v20, %v436_v18 }
  0x5e   : > { %337 = vrot.lane.b32.xlu0 %v1262_v5, %s1078_s1  ;;  %v491_v22 = vsel %vm490_vm5, 1.0, %v1079_v15  ;;  %v1288_v23 = vsel %vm493_vm6, 1.0, %v1079_v15  ;;  %v346_v31 = vrot.slane %v1265_v7, 1  ;;  %v347_v32 = vrot.slane %v1262_v5, 1 }
  0x5f   : > { %v1291_v24 = vmul.f32 %v385_v19, %v1262_v5  ;;  %v495_v25 = vmul.f32 %v1288_v23, %v491_v22  ;;  %v1295_v26 = vmul.f32 %v440_v21, %v1262_v5  ;;  %v345_v33 = vsel %vm344_vm7, 1.0, %v1079_v15 }
  0x60   : > { %vm333_vm8 = vcmp.lt.s32.totalorder %v1252_v2, 127  ;;  %v348_v34 = vmul.f32 %v347_v32, %v345_v33  ;;  %v349_v35 = vsub.f32 %v346_v31, %v1265_v7  ;;  %vm454_vm9 = vcmp.lt.s32.totalorder %v1250_v1, 4 }
  0x61   : > { %392 = vrot.lane.b32.xlu1 %v1291_v24, %s1080_s10  ;;  %v1299_v27 = vmul.f32 %v495_v25, %v1262_v5  ;;  %v442_v28 = vmul.f32 %v1295_v26, %v318_v6  ;;  %v1307_v30 = vmul.f32 %v1291_v24, %v318_v6  ;;  %v334_v38 = vsel %vm333_vm8, 1.0, %v1079_v15 }
  0x62   : > { %v457_v40 = vrot.slane %v1295_v26, 4  ;;  %v350_v41 = vand.u32 2147483647, %v349_v35  ;;  %v351_v42 = vmul.f32 %v348_v34, %v1262_v5  ;;  %v455_v43 = vsel %vm454_vm9, 1.0, %v1079_v15 }
  0x63   : > { %445 = vrot.lane.b32.xlu0 %v442_v28, %s1081_s29  ;;  %v1303_v29 = vmul.f32 %v1299_v27, %v318_v6  ;;  %v456_v39 = vrot.slane %v442_v28, 4  ;;  %vm399_vm10 = vcmp.lt.s32.totalorder %v1250_v1, 6  ;;  %v401_v47 = vrot.slane %v1307_v30, 2 }
  0x64   : > { %vm443_vm11 = vcmp.lt.s32.totalorder %v1252_v2, 124  ;;  %v458_v48 = vmul.f32 %v457_v40, %v455_v43  ;;  %v402_v50 = vrot.slane %v1291_v24, 2  ;;  %v352_v53 = vmul.f32 %v351_v42, %v350_v41 }
  0x65   : > { %447 = vrot.lane.b32.xlu1 %v1295_v26, %s1081_s29  ;;  %v459_v49 = vsub.f32 %v456_v39, %v442_v28  ;;  %v400_v54 = vsel %vm399_vm10, 1.0, %v1079_v15  ;;  %vm388_vm12 = vcmp.lt.s32.totalorder %v1252_v2, 126  ;;  %v444_v56 = vsel %vm443_vm11, 1.0, %v1079_v15 }
  0x66   : > { %v404_v57 = vsub.f32 %v401_v47, %v1307_v30  ;;  %v461_v60 = vmul.f32 %v458_v48, %v1295_v26  ;;  %v403_v61 = vmul.f32 %v402_v50, %v400_v54  ;;  %v389_v62 = vsel %vm388_vm12, 1.0, %v1079_v15 }
  0x67   : > { %500 = vrot.lane.b32.xlu0 %v1303_v29, %s1082_s6  ;;  %v460_v59 = vand.u32 2147483647, %v459_v49  ;;  %vm498_vm13 = vcmp.lt.s32.totalorder %v1252_v2, 120  ;;  %v511_v8 = vmul.f32 0.0, %v1299_v27  ;;  %v512_v9 = vsub.f32 %v1303_v29, %v1303_v29 }
  0x68   : > { %v405_v6 = vand.u32 2147483647, %v404_v57  ;;  %v406_v14 = vmul.f32 %v403_v61, %v1291_v24  ;;  %v499_v22 = vsel %vm498_vm13, 1.0, %v1079_v15  ;;  %vm353_vm14 = vcmp.eq.s32.totalorder %v1252_v2, 0 }
  0x69   : > { %390 = vrot.lane.b32.xlu1 %v1307_v30, %s1080_s10  ;;  %v462_v13 = vmul.f32 %v461_v60, %v460_v59  ;;  %v513_v25 = vand.u32 2147483647, %v512_v9  ;;  %vm408_vm15 = vcmp.eq.s32.totalorder %v1252_v2, 1  ;;  %vm463_vm0 = vcmp.eq.s32.totalorder %v1252_v2, 2 }
  0x6a   : > { %vm516_vm1 = vcmp.eq.s32.totalorder %v1252_v2, 3  ;;  %vm542_vm2 = vcmask 24576  }
  0x6d   : > { %502 = vrot.lane.b32.xlu1 %v1299_v27, %s1082_s6 }
  0x86   : > { %422 = vadd.xlane.f32.xlu0 %v1291_v24 }
  0x8a   : > { %477 = vadd.xlane.f32.xlu0 %v1295_v26 }
  0x91   : > { %367 = vadd.xlane.f32.xlu1 %v1262_v5 }
  0xcc   : > { %v336_v36 = vpop.permute.xlu0 %335 }
  0xcd   : > { %v340_v37 = vsub.f32 %v336_v36, %v1265_v7 }
  0xcf   : > { %v341_v45 = vand.u32 2147483647, %v340_v37 }
  0xd0   : > { %v338_v44 = vpop.permute.xlu0 %337 }
  0xd1   : > { %v339_v46 = vmul.f32 %v338_v44, %v334_v38 }
  0xd3   : > { %v342_v51 = vmul.f32 %v339_v46, %v1262_v5  ;;  %v393_v52 = vpop.permute.xlu1 %392 }
  0xd4   : > { %v394_v10 = vmul.f32 %v393_v52, %v389_v62 }
  0xd5   : > { %v343_v55 = vmul.f32 %v342_v51, %v341_v45  ;;  %v446_v58 = vpop.permute.xlu0 %445 }
  0xd6   : > { %v450_v63 = vsub.f32 %v446_v58, %v442_v28  ;;  %v514_v28 = vmul.f32 %v511_v8, %v1299_v27  ;;  %v397_v31 = vmul.f32 %v394_v10, %v1291_v24 }
  0xd7   : > { %v448_v0 = vpop.permute.xlu1 %447  ;;  %v354_v1 = vadd.f32 %v352_v53, %v343_v55 }
  0xd8   : > { %v449_v3 = vmul.f32 %v448_v0, %v444_v56  ;;  %v451_v4 = vand.u32 2147483647, %v450_v63 }
  0xd9   : > { %355 = vadd.xlane.f32.xlu0 %v354_v1  ;;  %v501_v12 = vpop.permute.xlu0 %500 }
  0xda   : > { %v452_v11 = vmul.f32 %v449_v3, %v1295_v26  ;;  %v505_v19 = vsub.f32 %v501_v12, %v1303_v29  ;;  %v407_v26 = vmul.f32 %v406_v14, %v405_v6  ;;  %v515_v29 = vmul.f32 %v514_v28, %v513_v25 }
  0xdb   : > { %v391_v16 = vpop.permute.xlu1 %390 }
  0xdc   : > { %v395_v18 = vsub.f32 %v391_v16, %v1307_v30  ;;  %v453_v21 = vmul.f32 %v452_v11, %v451_v4  ;;  %v506_v36 = vand.u32 2147483647, %v505_v19 }
  0xde   : > { %v396_v32 = vand.u32 2147483647, %v395_v18  ;;  %v464_v33 = vadd.f32 %v462_v13, %v453_v21 }
  0xdf   : > { %v503_v34 = vpop.permute.xlu1 %502 }
  0xe0   : > { %v398_v35 = vmul.f32 %v397_v31, %v396_v32  ;;  %v504_v37 = vmul.f32 %v503_v34, %v499_v22  ;;  %465 = vadd.xlane.f32.xlu1 %v464_v33 }
  0xe2   : > { %v507_v30 = vmul.f32 %v504_v37, %v1299_v27  ;;  %v409_v38 = vadd.f32 %v407_v26, %v398_v35 }
  0xe4   : > { %410 = vadd.xlane.f32.xlu0 %v409_v38  ;;  %v508_v39 = vmul.f32 %v507_v30, %v506_v36 }
  0xe6   : > { %v517_v15 = vadd.f32 %v515_v29, %v508_v39 }
  0xe8   : > { %518 = vadd.xlane.f32.xlu1 %v517_v15  ;;  %530 = vadd.xlane.f32.xlu0 %v1299_v27 }
 0x10f   : > { %v423_v24 = vpop.xlane.xlu0 %422 }
 0x110   : > { %v424_v48 = vrot.slane %v423_v24, 4 }
 0x112   : > { %v425_v53 = vadd.f32 %v424_v48, %v423_v24 }
 0x113   : > { %v478_v42 = vpop.xlane.xlu0 %477 }
 0x114   : > { %v479_v50 = vrot.slane %v478_v42, 4  ;;  %v426_v60 = vrot.slane %v425_v53, 2 }
 0x116   : > { %v480_v57 = vadd.f32 %v479_v50, %v478_v42  ;;  %v427_v8 = vadd.f32 %v426_v60, %v425_v53 }
 0x118   : > { %v481_v1 = vrot.slane %v480_v57, 2  ;;  %v428_v19 = vrot.slane %v427_v8, 1 }
 0x11a   : > { %v368_v40 = vpop.xlane.xlu1 %367  ;;  %v482_v13 = vadd.f32 %v481_v1, %v480_v57  ;;  %v429_v34 = vadd.f32 %v428_v19, %v427_v8 }
 0x11b   : > { %v369_v41 = vrot.slane %v368_v40, 4 }
 0x11c   : > { %v483_v31 = vrot.slane %v482_v13, 1 }
 0x11d   : > { %v370_v43 = vadd.f32 %v369_v41, %v368_v40  ;;  %v331_v40 = vld [vmem:[#allocation2] sm:$0x1]  ;;  %v332_v41 = vld [vmem:[#allocation3] sm:$0x1] }
 0x11e   : > { %v484_v30 = vadd.f32 %v483_v31, %v482_v13 }
 0x11f   : > { %v371_v44 = vrot.slane %v370_v43, 2 }
 0x121   : > { %v372_v47 = vadd.f32 %v371_v44, %v370_v43 }
 0x123   : > { %v373_v52 = vrot.slane %v372_v47, 1 }
 0x125   : > { %v374_v59 = vadd.f32 %v373_v52, %v372_v47 }
 0x162   : > { %v356_v45 = vpop.xlane.xlu0 %355 }
 0x163   : > { %v357_v46 = vrot.slane %v356_v45, 4 }
 0x165   : > { %v358_v49 = vadd.f32 %v357_v46, %v356_v45 }
 0x167   : > { %v359_v51 = vrot.slane %v358_v49, 2 }
 0x169   : > { %v466_v54 = vpop.xlane.xlu1 %465  ;;  %v360_v55 = vadd.f32 %v359_v51, %v358_v49 }
 0x16a   : > { %v467_v56 = vrot.slane %v466_v54, 4 }
 0x16b   : > { %v361_v27 = vrot.slane %v360_v55, 1 }
 0x16c   : > { %v468_v58 = vadd.f32 %v467_v56, %v466_v54 }
 0x16d   : > { %v411_v61 = vpop.xlane.xlu0 %410  ;;  %v362_v62 = vadd.f32 %v361_v27, %v360_v55 }
 0x16e   : > { %v469_v63 = vrot.slane %v468_v58, 2  ;;  %v412_v0 = vrot.slane %v411_v61, 4 }
 0x16f   : > { %807 = vpush %v362_v62 }
 0x170   : > { %v413_v3 = vadd.f32 %v412_v0, %v411_v61  ;;  %809 = vpush %v374_v59  ;;  %v470_v12 = vadd.f32 %v469_v63, %v468_v58 }
 0x171   : > { %v519_v4 = vpop.xlane.xlu1 %518  ;;  %v531_v6 = vpop.xlane.xlu0 %530 }
 0x172   : > { %v414_v9 = vrot.slane %v413_v3, 2  ;;  %v520_v10 = vrot.slane %v519_v4, 4  ;;  %v532_v11 = vrot.slane %v531_v6, 4  ;;  %v471_v28 = vrot.slane %v470_v12, 1 }
 0x174   : > { %v521_v14 = vadd.f32 %v520_v10, %v519_v4  ;;  %v533_v16 = vadd.f32 %v532_v11, %v531_v6  ;;  %v415_v18 = vadd.f32 %v414_v9, %v413_v3  ;;  %v472_v35 = vadd.f32 %v471_v28, %v470_v12 }
 0x176   : > { %v522_v21 = vrot.slane %v521_v14, 2  ;;  %v534_v22 = vrot.slane %v533_v16, 2  ;;  %v416_v25 = vrot.slane %v415_v18, 1 }
 0x178   : > { %v523_v32 = vadd.f32 %v522_v21, %v521_v14  ;;  %v535_v33 = vadd.f32 %v534_v22, %v533_v16  ;;  %v417_v26 = vadd.f32 %v416_v25, %v415_v18 }
 0x17a   : > { %811 = vpush %v417_v26  ;;  %v524_v36 = vrot.slane %v523_v32, 1  ;;  %v536_v37 = vrot.slane %v535_v33, 1 }
 0x17b   : > { %813 = vpush %v429_v34 }
 0x17c   : > { %815 = vpush %v472_v35  ;;  %v525_v38 = vadd.f32 %v524_v36, %v523_v32  ;;  %v537_v29 = vadd.f32 %v536_v37, %v535_v33 }
 0x17d   : > { %817 = vpush %v484_v30 }
 0x17e   : > { %819 = vpush %v525_v38 }
 0x17f   : > { %821 = vpush %v537_v29 }
 0x1a0   : > { %s808_s11 = spop %807 }
 0x1a1   : > { %s810_s14 = spop %809  ;;  %v364_v39 = vstv %s808_s11 }
 0x1a2   : > { %v376_v15 = vstv %s810_s14  ;;  %v365_v24 = vsel %vm353_vm14, %v364_v39, 0.0 }
 0x1a3   : > { %v377_v42 = vsel %vm353_vm14, %v376_v15, 0.0  ;;  %v366_v43 = vadd.f32 %v365_v24, %v331_v40 }
 0x1a4   : > { %v378_v45 = vadd.f32 %v377_v42, %v332_v41 }
 0x1ab   : > { %s812_s26 = spop %811 }
 0x1ac   : > { %v419_v44 = vstv %s812_s26  ;;  %s814_s7 = spop %813 }
 0x1ad   : > { %v420_v46 = vsel %vm408_vm15, %v419_v44, 0.0  ;;  %v431_v47 = vstv %s814_s7  ;;  %s816_s8 = spop %815 }
 0x1ae   : > { %v421_v48 = vadd.f32 %v420_v46, %v366_v43  ;;  %v432_v49 = vsel %vm408_vm15, %v431_v47, 0.0  ;;  %v474_v50 = vstv %s816_s8  ;;  %s818_s5 = spop %817 }
 0x1af   : > { %v433_v51 = vadd.f32 %v432_v49, %v378_v45  ;;  %v475_v52 = vsel %vm463_vm0, %v474_v50, 0.0  ;;  %v486_v53 = vstv %s818_s5  ;;  %s820_s0 = spop %819 }
 0x1b0   : > { %v476_v54 = vadd.f32 %v475_v52, %v421_v48  ;;  %v487_v55 = vsel %vm463_vm0, %v486_v53, 0.0  ;;  %v527_v56 = vstv %s820_s0  ;;  %s822_s30 = spop %821 }
 0x1b1   : > { %v488_v57 = vadd.f32 %v487_v55, %v433_v51  ;;  %v528_v27 = vsel %vm516_vm1, %v527_v56, 0.0  ;;  %v539_v58 = vstv %s822_s30  ;;  %548 = sbr.rel (%p803_p12) target bundleno = 659 (0x293), region = 52 }
 0x1b2   : > { %v529_v59 = vadd.f32 %v528_v27, %v476_v54  ;;  %v540_v60 = vsel %vm516_vm1, %v539_v58, 0.0 }
 0x1b3   : > { %v541_v61 = vadd.f32 %v540_v60, %v488_v57 }
 0x1b4   : > { %543 = vst.msk [vmem:[#allocation2] sm:$0x1] %vm542_vm2, %v529_v59 }
 0x1b5   : > { %544 = vst.msk [vmem:[#allocation3] sm:$0x1] %vm542_vm2, %v541_v61 }
 0x1b6   : > { %v590_v62 = vld [vmem:[#allocation4 + $0x4] sm:$0x1]  ;;  %v591_v63 = vld [vmem:[#allocation5 + $0x4] sm:$0x1]  ;;  %v550_v3 = vld [vmem:[#allocation4 + $0x7] sm:$0x1] }
 0x1b7   : > { %v592_v0 = vsub.f32 %v1265_v7, %v590_v62  ;;  %v594_v1 = vmul.f32 %v591_v63, %v1262_v5  ;;  %v551_v4 = vld [vmem:[#allocation5 + $0x7] sm:$0x1]  ;;  %v610_v6 = vld [vmem:[#allocation4] sm:$0x1]  ;;  %v552_v8 = vsub.f32 %v1265_v7, %v550_v3  ;;  %v611_v10 = vld [vmem:[#allocation5] sm:$0x1] }
 0x1b8   : > { %v554_v9 = vmul.f32 %v551_v4, %v1262_v5  ;;  %v612_v11 = vsub.f32 %v1265_v7, %v610_v6  ;;  %v570_v12 = vld [vmem:[#allocation4 + $0x6] sm:$0x1]  ;;  %v571_v13 = vld [vmem:[#allocation5 + $0x6] sm:$0x1]  ;;  %v614_v18 = vmul.f32 %v611_v10, %v1262_v5  ;;  %vm556_vm3 = vcmask 1040384  }
 0x1b9   : > { %v593_v14 = vand.u32 2147483647, %v592_v0  ;;  %v595_v16 = vmul.f32 %v594_v1, %v1282_v20  ;;  %v572_v19 = vsub.f32 %v1265_v7, %v570_v12  ;;  %v553_v21 = vand.u32 2147483647, %v552_v8 }
 0x1ba   : > { %v613_v22 = vand.u32 2147483647, %v612_v11  ;;  %v574_v25 = vmul.f32 %v571_v13, %v1262_v5  ;;  %v615_v31 = vmul.f32 %v614_v18, %v1288_v23 }
 0x1bb   : > { %v596_v28 = vmul.f32 %v595_v16, %v593_v14  ;;  %v573_v32 = vand.u32 2147483647, %v572_v19  ;;  %v555_v33 = vmul.f32 %v554_v9, %v553_v21  ;;  %v549_v61 = vld [vmem:[#allocation2] sm:$0x1] }
 0x1bc   : > { %v575_v26 = vmul.f32 %v574_v25, %v1277_v17  ;;  %v616_v35 = vmul.f32 %v615_v31, %v613_v22 }
 0x1bd   : > { %v597_v34 = vsel %vm556_vm3, %v596_v28, 0.0  ;;  %v557_v20 = vsel %vm556_vm3, %v555_v33, 0.0 }
 0x1be   : > { %598 = vadd.xlane.f32.xlu1 %v597_v34  ;;  %v576_v36 = vmul.f32 %v575_v26, %v573_v32  ;;  %558 = vadd.xlane.f32.xlu0 %v557_v20  ;;  %v617_v37 = vsel %vm556_vm3, %v616_v35, 0.0 }
 0x1c0   : > { %v577_v30 = vsel %vm556_vm3, %v576_v36, 0.0 }
 0x1c2   : > { %618 = vadd.xlane.f32.xlu1 %v617_v37  ;;  %578 = vadd.xlane.f32.xlu0 %v577_v30 }
 0x247   : > { %v599_v38 = vpop.xlane.xlu1 %598  ;;  %v559_v29 = vpop.xlane.xlu0 %558 }
 0x248   : > { %v600_v23 = vrot.slane %v599_v38, 4  ;;  %v560_v39 = vrot.slane %v559_v29, 4 }
 0x24a   : > { %v601_v15 = vadd.f32 %v600_v23, %v599_v38  ;;  %v561_v17 = vadd.f32 %v560_v39, %v559_v29 }
 0x24b   : > { %v619_v40 = vpop.xlane.xlu1 %618  ;;  %v579_v42 = vpop.xlane.xlu0 %578 }
 0x24c   : > { %v602_v24 = vrot.slane %v601_v15, 2  ;;  %v620_v41 = vrot.slane %v619_v40, 4  ;;  %v562_v43 = vrot.slane %v561_v17, 2  ;;  %v580_v44 = vrot.slane %v579_v42, 4 }
 0x24e   : > { %v621_v45 = vadd.f32 %v620_v41, %v619_v40  ;;  %v581_v46 = vadd.f32 %v580_v44, %v579_v42  ;;  %v563_v47 = vadd.f32 %v562_v43, %v561_v17  ;;  %v603_v49 = vadd.f32 %v602_v24, %v601_v15 }
 0x250   : > { %v622_v48 = vrot.slane %v621_v45, 2  ;;  %v582_v50 = vrot.slane %v581_v46, 2  ;;  %v564_v51 = vrot.slane %v563_v47, 1  ;;  %v604_v55 = vrot.slane %v603_v49, 1 }
 0x252   : > { %v623_v52 = vadd.f32 %v622_v48, %v621_v45  ;;  %v583_v53 = vadd.f32 %v582_v50, %v581_v46  ;;  %v565_v54 = vadd.f32 %v564_v51, %v563_v47  ;;  %v605_v59 = vadd.f32 %v604_v55, %v603_v49 }
 0x254   : > { %v624_v56 = vrot.slane %v623_v52, 1  ;;  %823 = vpush %v565_v54  ;;  %v584_v57 = vrot.slane %v583_v53, 1 }
 0x256   : > { %v585_v27 = vadd.f32 %v584_v57, %v583_v53  ;;  %v625_v58 = vadd.f32 %v624_v56, %v623_v52 }
 0x258   : > { %825 = vpush %v585_v27 }
 0x259   : > { %827 = vpush %v605_v59 }
 0x25a   : > { %829 = vpush %v625_v58 }
 0x285   : > { %s824_s12 = spop %823 }
 0x286   : > { %v567_v60 = vstv %s824_s12 }
 0x287   : > { %v568_v62 = vsel %vm353_vm14, %v567_v60, 0.0 }
 0x288   : > { %v569_v63 = vadd.f32 %v568_v62, %v549_v61 }
 0x289   : > { %s826_s13 = spop %825 }
 0x28a   : > { %v587_v0 = vstv %s826_s13  ;;  %s828_s27 = spop %827 }
 0x28b   : > { %v588_v1 = vsel %vm408_vm15, %v587_v0, 0.0  ;;  %v607_v3 = vstv %s828_s27  ;;  %s830_s15 = spop %829 }
 0x28c   : > { %v589_v4 = vadd.f32 %v588_v1, %v569_v63  ;;  %v627_v6 = vstv %s830_s15  ;;  %v608_v8 = vsel %vm463_vm0, %v607_v3, 0.0 }
 0x28d   : > { %v628_v10 = vsel %vm516_vm1, %v627_v6, 0.0 }
 0x28e   : > { %v609_v9 = vadd.f32 %v608_v8, %v589_v4 }
 0x290   : > { %v629_v11 = vadd.f32 %v628_v10, %v609_v9 }
 0x292   : > { %630 = vst.msk [vmem:[#allocation2] sm:$0x1] %vm542_vm2, %v629_v11 }
 0x293 PF: > { %631 = vst [vmem:[#allocation4] sm:$0xff] %v1265_v7  ;;  %632 = vst [vmem:[#allocation5] sm:$0xff] %v1262_v5  ;;  %p804_p8 = scmp.ne.s32.totalorder %s1056_s18, 1 }
 0x295   : > { %636 = sbr.rel (%p804_p8) target bundleno = 668 (0x29c), region = 56 }
 0x29a   : > { %v637_v12 = vld [vmem:[#allocation2] sm:$0x1]  ;;  %v639_v13 = vld [vmem:[#allocation3] sm:$0x1] }
 0x29b   : > { %638 = vst.msk [vmem:[%s311_s23] sm:$0x1] %vm542_vm2, %v637_v12  ;;  %640 = vst.msk [vmem:[%s314_s28] sm:$0x1] %vm542_vm2, %v639_v13 }
 0x29c PF: > { %s21_s22 = sadd.s32 1, %s1072_s22   ;;  %s1451_s15 = smov %s1048_s16 }
 0x29d   : > { %p18_p1 = scmp.ge.s32.totalorder %s21_s22, 6   ;;  %s1452_s16 = smov %s1052_s17 }
 0x29e   : > { %s1453_s17 = smov %s1181_s9  ;;  %s1454_s18 = smov %s1064_s20 }
 0x29f   : > { %s1455_s19 = smov %s1068_s21  ;;  %s1456_s20 = smov %s1459_s24 }
 0x2a0   : > { %s1457_s21 = smov %s1463_s25  ;;  %20 = sbr.rel (!%p18_p1) target bundleno = 10 (0xa), region = 120 }
 0x2a5   :  { %670 = vsyncpa [#allocation7], 1 }
 0x2a6   :  { %672 = vsyncpa [#allocation7 + $0x1], 1 }
 0x2a7   :  { %673 = vsyncpa [#allocation9], 1 }
 0x2a8   :  { %675 = vsyncpa [#allocation9 + $0x1], 1 }

</bundles_post_ra>
